<compile_context>
chip_gen: v5e
topology: v5e:2x2
jax: 0.10.0
libtpu: 0.0.40
codegen_flags: <defaults>
</compile_context>

<pallas_src>
import math
import functools

import numpy as np
import jax
import jax.numpy as jnp
from jax.experimental import pallas as pl
from jax.experimental.pallas import tpu as pltpu

# ---- model hyper-parameters (small, consistent with the module) -------------
BATCH = 2
SEQ = 8
D_MODEL = 32
N_HEAD = 4
D_FF = 64
NUM_LAYERS = 2
EPS = 1e-5
HD = D_MODEL // N_HEAD
VEC_ROWS_PER_LAYER = 8


def _layernorm(x, w, b):
    mean = jnp.mean(x, axis=-1, keepdims=True)
    var = jnp.mean((x - mean) ** 2, axis=-1, keepdims=True)
    return (x - mean) * jax.lax.rsqrt(var + EPS) * w + b


# ---------------------------------------------------------------------------
# Fused Pallas kernel: all encoder layers + final LayerNorm, one invocation.
# ---------------------------------------------------------------------------
def encoder_kernel(x_ref, wattn_ref, w1_ref, w2_ref, vec_ref, out_ref,
                   *, n_head, n_layers, batch, seq, d_model, d_ff):
    D = d_model
    hd = D // n_head
    BS = batch * seq
    h = x_ref[...]                                   # (B*S, D) f32, batch folded into M

    for l in range(n_layers):                        # static unroll over layers
        # ---- per-layer parameter slabs (few big loads, static value slices) --
        wattn = wattn_ref[l]                         # (D, 4D) bf16: [Wqkv(head-major) | Wo]
        wqkv = wattn[:, :3 * D]
        wo = wattn[:, 3 * D:]
        vl = vec_ref[l * VEC_ROWS_PER_LAYER:(l + 1) * VEC_ROWS_PER_LAYER, :]  # (8, 128) f32
        bqkv = vl[0:1, :3 * D]
        bo = vl[1:2, :D]
        ln1w = vl[2:3, :D]
        ln1b = vl[3:4, :D]
        ln2w = vl[4:5, :D]
        ln2b = vl[5:6, :D]
        b1 = vl[6:7, :d_ff]
        b2 = vl[7:8, :D]

        # ---- fused QKV projection: one (B*S, D) x (D, 3D) bf16 MXU dot -------
        # (Q columns are pre-scaled by 1/sqrt(hd) in the wrapper.)
        qkv = jnp.dot(h.astype(jnp.bfloat16), wqkv,
                      preferred_element_type=jnp.float32) + bqkv          # (BS, 3D)

        # ---- multi-head attention, heads stacked on the leading batch axis ---
        # head-major column layout -> one contiguous 24-lane extract per head.
        blocks = [qkv[:, hi * 3 * hd:(hi + 1) * 3 * hd].reshape(batch, seq, 3 * hd)
                  for hi in range(n_head)]
        qkv_hb = jnp.concatenate(blocks, axis=0)                          # (H*B, S, 3hd)
        q = qkv_hb[..., 0:hd].astype(jnp.bfloat16)
        k = qkv_hb[..., hd:2 * hd].astype(jnp.bfloat16)
        v = qkv_hb[..., 2 * hd:3 * hd].astype(jnp.bfloat16)

        # ONE batched score dot, ONE softmax chain, ONE batched context dot.
        s = jnp.einsum("bqd,bkd->bqk", q, k,
                       preferred_element_type=jnp.float32)                # (H*B, S, S)
        s = s - jnp.max(s, axis=-1, keepdims=True)
        p = jnp.exp(s)
        p = p * pl.reciprocal(jnp.sum(p, axis=-1, keepdims=True), approx=True)
        ctx = jnp.einsum("bqk,bkd->bqd", p.astype(jnp.bfloat16), v,
                         preferred_element_type=jnp.float32)              # (H*B, S, hd)

        # reassemble heads on the lane axis, then ONE output projection.
        ctx_r = ctx.reshape(n_head, BS, hd)
        ctx_cat = jnp.concatenate([ctx_r[hi] for hi in range(n_head)],
                                  axis=-1)                                # (BS, D)
        attn = jnp.dot(ctx_cat.astype(jnp.bfloat16), wo,
                       preferred_element_type=jnp.float32) + bo

        # ---- residual + LayerNorm 1 (post-norm, dropout = 0) -----------------
        h1 = _layernorm(h + attn, ln1w, ln1b)

        # ---- feed-forward: relu(h1 @ W1 + b1) @ W2 + b2 -----------------------
        ff = jnp.maximum(
            jnp.dot(h1.astype(jnp.bfloat16), w1_ref[l],
                    preferred_element_type=jnp.float32) + b1, 0.0)
        ff = jnp.dot(ff.astype(jnp.bfloat16), w2_ref[l],
                     preferred_element_type=jnp.float32) + b2

        # ---- residual + LayerNorm 2 -------------------------------------------
        h = _layernorm(h1 + ff, ln2w, ln2b)

    # final (optional) LayerNorm of the encoder stack
    tail = vec_ref[n_layers * VEC_ROWS_PER_LAYER:n_layers * VEC_ROWS_PER_LAYER + 2, :]
    out_ref[...] = _layernorm(h, tail[0:1, :D], tail[1:2, :D])


# ---------------------------------------------------------------------------
# Wrapper: single pallas_call, no grid, 5 operands, everything VMEM-resident.
# ---------------------------------------------------------------------------
def _cost_estimate(B, S):
    BS, HB = B * S, N_HEAD * B
    per_layer = (2 * BS * D_MODEL * 3 * D_MODEL        # qkv
                 + 2 * HB * S * S * HD                 # scores
                 + 2 * HB * S * S * HD                 # context
                 + 2 * BS * D_MODEL * D_MODEL          # out projection
                 + 2 * BS * D_MODEL * D_FF             # ffn1
                 + 2 * BS * D_FF * D_MODEL)            # ffn2
    flops = NUM_LAYERS * per_layer
    trans = NUM_LAYERS * (HB * S * S + HB * S + 2 * BS) + BS
    bytes_acc = (2 * BS * D_MODEL * 4
                 + NUM_LAYERS * (D_MODEL * 4 * D_MODEL
                                 + 2 * D_MODEL * D_FF) * 2
                 + (NUM_LAYERS * VEC_ROWS_PER_LAYER + 2) * 128 * 4)
    return pl.CostEstimate(flops=flops, transcendentals=trans,
                           bytes_accessed=bytes_acc)


def transformer_encoder(x, wattn, w1s, w2s, vec):
    B, S, D = x.shape
    x2 = x.reshape(B * S, D)                           # fold batch into matmul M dim

    kernel = functools.partial(encoder_kernel, n_head=N_HEAD, n_layers=NUM_LAYERS,
                               batch=B, seq=S, d_model=D, d_ff=D_FF)
    operands = [x2, wattn, w1s, w2s, vec]

    out = pl.pallas_call(
        kernel,
        out_shape=jax.ShapeDtypeStruct((B * S, D), jnp.float32),
        in_specs=[pl.BlockSpec(memory_space=pltpu.MemorySpace.VMEM)
                  for _ in operands],
        out_specs=pl.BlockSpec(memory_space=pltpu.MemorySpace.VMEM),
        cost_estimate=_cost_estimate(B, S),
    )(*operands)
    return out.reshape(B, S, D)


# ---------------------------------------------------------------------------
# Parameter packing (wrapper-side, one-time): fuse/permute/pad/cast.
# ---------------------------------------------------------------------------
def _pad_row(v, width=128):
    return jnp.pad(v.astype(jnp.float32), ((0, 0), (0, width - v.shape[-1])))


def pack_params(layer_params, norm_w, norm_b):
    scale = 1.0 / math.sqrt(HD)
    # head-major column permutation of the fused [Wq|Wk|Wv] (free, done once).
    perm = np.concatenate([
        np.concatenate([hi * HD + np.arange(HD),
                        D_MODEL + hi * HD + np.arange(HD),
                        2 * D_MODEL + hi * HD + np.arange(HD)])
        for hi in range(N_HEAD)])

    wattn_list, w1_list, w2_list, vec_rows = [], [], [], []
    for p in layer_params:
        # fold the 1/sqrt(hd) score scale into the Q columns (weights + bias).
        wqkv = jnp.concatenate([p["wq"] * scale, p["wk"], p["wv"]], axis=1)[:, perm]
        bqkv = jnp.concatenate([p["bq"] * scale, p["bk"], p["bv"]], axis=1)[:, perm]
        wattn_list.append(jnp.concatenate([wqkv, p["wo"]], axis=1))        # (D, 4D)
        w1_list.append(p["w1"])
        w2_list.append(p["w2"])
        vec_rows += [_pad_row(bqkv), _pad_row(p["bo"]),
                     _pad_row(p["ln1w"]), _pad_row(p["ln1b"]),
                     _pad_row(p["ln2w"]), _pad_row(p["ln2b"]),
                     _pad_row(p["b1"]), _pad_row(p["b2"])]
    vec_rows += [_pad_row(norm_w), _pad_row(norm_b)]

    wattn = jnp.stack(wattn_list, axis=0).astype(jnp.bfloat16)             # (L, D, 4D)
    w1s = jnp.stack(w1_list, axis=0).astype(jnp.bfloat16)                  # (L, D, FF)
    w2s = jnp.stack(w2_list, axis=0).astype(jnp.bfloat16)                  # (L, FF, D)
    vec = jnp.concatenate(vec_rows, axis=0)                                # (8L+2, 128) f32
    return wattn, w1s, w2s, vec


# ---------------------------------------------------------------------------
# Deterministic parameter initialization (synthetic, not a checkpoint load)
# ---------------------------------------------------------------------------
def init_layer_params(key):
    ks = jax.random.split(key, 6)
    s = 0.05
    return {
        "wq": s * jax.random.normal(ks[0], (D_MODEL, D_MODEL), jnp.float32),
        "bq": jnp.zeros((1, D_MODEL), jnp.float32),
        "wk": s * jax.random.normal(ks[1], (D_MODEL, D_MODEL), jnp.float32),
        "bk": jnp.zeros((1, D_MODEL), jnp.float32),
        "wv": s * jax.random.normal(ks[2], (D_MODEL, D_MODEL), jnp.float32),
        "bv": jnp.zeros((1, D_MODEL), jnp.float32),
        "wo": s * jax.random.normal(ks[3], (D_MODEL, D_MODEL), jnp.float32),
        "bo": jnp.zeros((1, D_MODEL), jnp.float32),
        "ln1w": jnp.ones((1, D_MODEL), jnp.float32),
        "ln1b": jnp.zeros((1, D_MODEL), jnp.float32),
        "ln2w": jnp.ones((1, D_MODEL), jnp.float32),
        "ln2b": jnp.zeros((1, D_MODEL), jnp.float32),
        "w1": s * jax.random.normal(ks[4], (D_MODEL, D_FF), jnp.float32),
        "b1": jnp.zeros((1, D_FF), jnp.float32),
        "w2": s * jax.random.normal(ks[5], (D_FF, D_MODEL), jnp.float32),
        "b2": jnp.zeros((1, D_MODEL), jnp.float32),
    }


# ---------------------------------------------------------------------------
# Pure-JAX reference (same math, f32, exact softmax) for a correctness check.
# ---------------------------------------------------------------------------
def ref_layer(x, p):
    B, S, D = x.shape
    hd = D // N_HEAD
    scale = 1.0 / math.sqrt(hd)
    q = x @ p["wq"] + p["bq"]
    k = x @ p["wk"] + p["bk"]
    v = x @ p["wv"] + p["bv"]
    qh = q.reshape(B, S, N_HEAD, hd).transpose(0, 2, 1, 3)
    kh = k.reshape(B, S, N_HEAD, hd).transpose(0, 2, 1, 3)
    vh = v.reshape(B, S, N_HEAD, hd).transpose(0, 2, 1, 3)
    s = jnp.einsum("bhqd,bhkd->bhqk", qh, kh) * scale
    pattn = jax.nn.softmax(s, axis=-1)
    ctx = jnp.einsum("bhqk,bhkd->bhqd", pattn, vh)
    ctx = ctx.transpose(0, 2, 1, 3).reshape(B, S, D)
    attn = ctx @ p["wo"] + p["bo"]
    h1 = _layernorm(x + attn, p["ln1w"], p["ln1b"])
    ff = jnp.maximum(h1 @ p["w1"] + p["b1"], 0.0) @ p["w2"] + p["b2"]
    return _layernorm(h1 + ff, p["ln2w"], p["ln2b"])


def ref_encoder(x, layer_params_list, norm_w, norm_b):
    out = x
    for p in layer_params_list:
        out = ref_layer(out, p)
    return _layernorm(out, norm_w, norm_b)


if __name__ == "__main__":
    key = jax.random.PRNGKey(0)
    k_in, *k_layers = jax.random.split(key, NUM_LAYERS + 1)

    src = jax.random.normal(k_in, (BATCH, SEQ, D_MODEL), jnp.float32)
    layer_params = [init_layer_params(k) for k in k_layers]
    norm_w = jnp.ones((1, D_MODEL), jnp.float32)     # norm.weight.fill_(1.0)
    norm_b = jnp.zeros((1, D_MODEL), jnp.float32)    # norm.bias.zero_()

    wattn, w1s, w2s, vec = pack_params(layer_params, norm_w, norm_b)
    out = transformer_encoder(src, wattn, w1s, w2s, vec)
    out = jax.block_until_ready(out)

    ref = ref_encoder(src, layer_params, norm_w, norm_b)
    max_err = float(jnp.max(jnp.abs(out - ref)))
    assert out.shape == (BATCH, SEQ, D_MODEL)
    # bf16 MXU inputs + approx softmax reciprocal -> small deviation from the
    # exact-f32 reference; well inside 2e-2 at these scales.
    assert max_err < 2e-2, f"mismatch vs reference: {max_err}"

    print("KERNEL_OK")
</pallas_src>

<mosaic_0001>
module attributes {stable_mosaic.version = 11 : i64} {
  func.func @encoder_kernel(%arg0: memref<16x32xf32, #tpu.memory_space<vmem>>, %arg1: memref<2x32x128xbf16, #tpu.memory_space<vmem>>, %arg2: memref<2x32x64xbf16, #tpu.memory_space<vmem>>, %arg3: memref<2x64x32xbf16, #tpu.memory_space<vmem>>, %arg4: memref<18x128xf32, #tpu.memory_space<vmem>>, %arg5: memref<16x32xf32, #tpu.memory_space<vmem>>) attributes {dimension_semantics = [], scalar_prefetch = 0 : i64, scratch_operands = 0 : i64, tpu.core_type = #tpu.core_type<tc>} {
    %c0 = arith.constant 0 : index
    %c0_0 = arith.constant 0 : index
    %0 = vector.load %arg0[%c0, %c0_0] : memref<16x32xf32, #tpu.memory_space<vmem>>, vector<16x32xf32>
    %c0_1 = arith.constant 0 : index
    %c0_2 = arith.constant 0 : index
    %c0_3 = arith.constant 0 : index
    %1 = vector.load %arg1[%c0_1, %c0_2, %c0_3] : memref<2x32x128xbf16, #tpu.memory_space<vmem>>, vector<1x32x128xbf16>
    %2 = vector.shape_cast %1 : vector<1x32x128xbf16> to vector<32x128xbf16>
    %3 = vector.extract_strided_slice %2 {offsets = [0, 0], sizes = [32, 96], strides = [1, 1]} : vector<32x128xbf16> to vector<32x96xbf16>
    %4 = vector.extract_strided_slice %2 {offsets = [0, 96], sizes = [32, 32], strides = [1, 1]} : vector<32x128xbf16> to vector<32x32xbf16>
    %c0_4 = arith.constant 0 : index
    %c0_5 = arith.constant 0 : index
    %5 = vector.load %arg4[%c0_4, %c0_5] : memref<18x128xf32, #tpu.memory_space<vmem>>, vector<8x128xf32>
    %6 = vector.extract_strided_slice %5 {offsets = [0, 0], sizes = [1, 96], strides = [1, 1]} : vector<8x128xf32> to vector<1x96xf32>
    %7 = vector.extract_strided_slice %5 {offsets = [1, 0], sizes = [1, 32], strides = [1, 1]} : vector<8x128xf32> to vector<1x32xf32>
    %8 = vector.extract_strided_slice %5 {offsets = [2, 0], sizes = [1, 32], strides = [1, 1]} : vector<8x128xf32> to vector<1x32xf32>
    %9 = vector.extract_strided_slice %5 {offsets = [3, 0], sizes = [1, 32], strides = [1, 1]} : vector<8x128xf32> to vector<1x32xf32>
    %10 = vector.extract_strided_slice %5 {offsets = [4, 0], sizes = [1, 32], strides = [1, 1]} : vector<8x128xf32> to vector<1x32xf32>
    %11 = vector.extract_strided_slice %5 {offsets = [5, 0], sizes = [1, 32], strides = [1, 1]} : vector<8x128xf32> to vector<1x32xf32>
    %12 = vector.extract_strided_slice %5 {offsets = [6, 0], sizes = [1, 64], strides = [1, 1]} : vector<8x128xf32> to vector<1x64xf32>
    %13 = vector.extract_strided_slice %5 {offsets = [7, 0], sizes = [1, 32], strides = [1, 1]} : vector<8x128xf32> to vector<1x32xf32>
    %14 = arith.truncf %0 : vector<16x32xf32> to vector<16x32xbf16>
    %cst = arith.constant dense<0.000000e+00> : vector<16x96xf32>
    %15 = tpu.matmul %14, %3, %cst {dimension_numbers = #tpu.dot_dimension_numbers<[1], [0], [0], [1], [0, 0, 1, 1], [], []>} : vector<16x32xbf16>, vector<32x96xbf16>, vector<16x96xf32> -> vector<16x96xf32>
    %16 = vector.broadcast %6 : vector<1x96xf32> to vector<16x96xf32>
    %17 = arith.addf %15, %16 : vector<16x96xf32>
    %18 = vector.extract_strided_slice %17 {offsets = [0, 0], sizes = [16, 24], strides = [1, 1]} : vector<16x96xf32> to vector<16x24xf32>
    %19 = vector.shape_cast %18 : vector<16x24xf32> to vector<2x8x24xf32>
    %20 = vector.extract_strided_slice %17 {offsets = [0, 24], sizes = [16, 24], strides = [1, 1]} : vector<16x96xf32> to vector<16x24xf32>
    %21 = vector.shape_cast %20 : vector<16x24xf32> to vector<2x8x24xf32>
    %22 = vector.extract_strided_slice %17 {offsets = [0, 48], sizes = [16, 24], strides = [1, 1]} : vector<16x96xf32> to vector<16x24xf32>
    %23 = vector.shape_cast %22 : vector<16x24xf32> to vector<2x8x24xf32>
    %24 = vector.extract_strided_slice %17 {offsets = [0, 72], sizes = [16, 24], strides = [1, 1]} : vector<16x96xf32> to vector<16x24xf32>
    %25 = vector.shape_cast %24 : vector<16x24xf32> to vector<2x8x24xf32>
    %26 = tpu.concatenate %19, %21, %23, %25 in 0 : vector<2x8x24xf32>, vector<2x8x24xf32>, vector<2x8x24xf32>, vector<2x8x24xf32> -> vector<8x8x24xf32>
    %27 = vector.extract_strided_slice %26 {offsets = [0, 0, 0], sizes = [8, 8, 8], strides = [1, 1, 1]} : vector<8x8x24xf32> to vector<8x8x8xf32>
    %28 = arith.truncf %27 : vector<8x8x8xf32> to vector<8x8x8xbf16>
    %29 = vector.extract_strided_slice %26 {offsets = [0, 0, 8], sizes = [8, 8, 8], strides = [1, 1, 1]} : vector<8x8x24xf32> to vector<8x8x8xf32>
    %30 = arith.truncf %29 : vector<8x8x8xf32> to vector<8x8x8xbf16>
    %31 = vector.extract_strided_slice %26 {offsets = [0, 0, 16], sizes = [8, 8, 8], strides = [1, 1, 1]} : vector<8x8x24xf32> to vector<8x8x8xf32>
    %32 = arith.truncf %31 : vector<8x8x8xf32> to vector<8x8x8xbf16>
    "tpu.trace_start"() <{level = 10 : i32, message = "bqd,bkd->bqk"}> : () -> ()
    %cst_6 = arith.constant dense<0.000000e+00> : vector<8x8x8xf32>
    %33 = tpu.matmul %28, %30, %cst_6 {dimension_numbers = #tpu.dot_dimension_numbers<[2], [2], [1], [1], [0, 0, 0, 1, 1, 1], [0], [0]>} : vector<8x8x8xbf16>, vector<8x8x8xbf16>, vector<8x8x8xf32> -> vector<8x8x8xf32>
    "tpu.trace_stop"() : () -> ()
    %cst_7 = arith.constant dense<0xFF800000> : vector<8x8xf32>
    %34 = vector.multi_reduction <maximumf>, %33, %cst_7 [2] : vector<8x8x8xf32> to vector<8x8xf32>
    %35 = vector.shape_cast %34 : vector<8x8xf32> to vector<8x8x1xf32>
    %36 = vector.broadcast %35 : vector<8x8x1xf32> to vector<8x8x8xf32>
    %37 = arith.subf %33, %36 : vector<8x8x8xf32>
    %38 = math.exp %37 : vector<8x8x8xf32>
    %cst_8 = arith.constant dense<0.000000e+00> : vector<8x8xf32>
    %39 = vector.multi_reduction <add>, %38, %cst_8 [2] : vector<8x8x8xf32> to vector<8x8xf32>
    %40 = vector.shape_cast %39 : vector<8x8xf32> to vector<8x8x1xf32>
    %41 = tpu.reciprocal %40 {approx = true} : vector<8x8x1xf32> -> vector<8x8x1xf32>
    %42 = vector.broadcast %41 : vector<8x8x1xf32> to vector<8x8x8xf32>
    %43 = arith.mulf %38, %42 : vector<8x8x8xf32>
    %44 = arith.truncf %43 : vector<8x8x8xf32> to vector<8x8x8xbf16>
    "tpu.trace_start"() <{level = 10 : i32, message = "bqk,bkd->bqd"}> : () -> ()
    %cst_9 = arith.constant dense<0.000000e+00> : vector<8x8x8xf32>
    %45 = tpu.matmul %44, %32, %cst_9 {dimension_numbers = #tpu.dot_dimension_numbers<[2], [1], [1], [2], [0, 0, 0, 1, 1, 2], [0], [0]>} : vector<8x8x8xbf16>, vector<8x8x8xbf16>, vector<8x8x8xf32> -> vector<8x8x8xf32>
    "tpu.trace_stop"() : () -> ()
    %46 = vector.shape_cast %45 : vector<8x8x8xf32> to vector<4x16x8xf32>
    %47 = vector.extract_strided_slice %46 {offsets = [0, 0, 0], sizes = [1, 16, 8], strides = [1, 1, 1]} : vector<4x16x8xf32> to vector<1x16x8xf32>
    %48 = vector.shape_cast %47 : vector<1x16x8xf32> to vector<16x8xf32>
    %49 = vector.extract_strided_slice %46 {offsets = [1, 0, 0], sizes = [1, 16, 8], strides = [1, 1, 1]} : vector<4x16x8xf32> to vector<1x16x8xf32>
    %50 = vector.shape_cast %49 : vector<1x16x8xf32> to vector<16x8xf32>
    %51 = vector.extract_strided_slice %46 {offsets = [2, 0, 0], sizes = [1, 16, 8], strides = [1, 1, 1]} : vector<4x16x8xf32> to vector<1x16x8xf32>
    %52 = vector.shape_cast %51 : vector<1x16x8xf32> to vector<16x8xf32>
    %53 = vector.extract_strided_slice %46 {offsets = [3, 0, 0], sizes = [1, 16, 8], strides = [1, 1, 1]} : vector<4x16x8xf32> to vector<1x16x8xf32>
    %54 = vector.shape_cast %53 : vector<1x16x8xf32> to vector<16x8xf32>
    %55 = tpu.concatenate %48, %50, %52, %54 in 1 : vector<16x8xf32>, vector<16x8xf32>, vector<16x8xf32>, vector<16x8xf32> -> vector<16x32xf32>
    %56 = arith.truncf %55 : vector<16x32xf32> to vector<16x32xbf16>
    %cst_10 = arith.constant dense<0.000000e+00> : vector<16x32xf32>
    %57 = tpu.matmul %56, %4, %cst_10 {dimension_numbers = #tpu.dot_dimension_numbers<[1], [0], [0], [1], [0, 0, 1, 1], [], []>} : vector<16x32xbf16>, vector<32x32xbf16>, vector<16x32xf32> -> vector<16x32xf32>
    %58 = vector.broadcast %7 : vector<1x32xf32> to vector<16x32xf32>
    %59 = arith.addf %57, %58 : vector<16x32xf32>
    %60 = arith.addf %0, %59 : vector<16x32xf32>
    %cst_11 = arith.constant dense<0.000000e+00> : vector<16xf32>
    %61 = vector.multi_reduction <add>, %60, %cst_11 [1] : vector<16x32xf32> to vector<16xf32>
    %62 = vector.shape_cast %61 : vector<16xf32> to vector<16x1xf32>
    %cst_12 = arith.constant 3.200000e+01 : f32
    %63 = vector.broadcast %cst_12 : f32 to vector<16x1xf32>
    %64 = arith.divf %62, %63 : vector<16x1xf32>
    %65 = vector.broadcast %64 : vector<16x1xf32> to vector<16x32xf32>
    %66 = arith.subf %60, %65 : vector<16x32xf32>
    %67 = arith.mulf %66, %66 : vector<16x32xf32>
    %cst_13 = arith.constant dense<0.000000e+00> : vector<16xf32>
    %68 = vector.multi_reduction <add>, %67, %cst_13 [1] : vector<16x32xf32> to vector<16xf32>
    %69 = vector.shape_cast %68 : vector<16xf32> to vector<16x1xf32>
    %cst_14 = arith.constant 3.200000e+01 : f32
    %70 = vector.broadcast %cst_14 : f32 to vector<16x1xf32>
    %71 = arith.divf %69, %70 : vector<16x1xf32>
    %72 = vector.broadcast %64 : vector<16x1xf32> to vector<16x32xf32>
    %73 = arith.subf %60, %72 : vector<16x32xf32>
    %cst_15 = arith.constant 9.99999974E-6 : f32
    %74 = vector.broadcast %cst_15 : f32 to vector<16x1xf32>
    %75 = arith.addf %71, %74 : vector<16x1xf32>
    %76 = math.rsqrt %75 : vector<16x1xf32>
    %77 = vector.broadcast %76 : vector<16x1xf32> to vector<16x32xf32>
    %78 = arith.mulf %73, %77 : vector<16x32xf32>
    %79 = vector.broadcast %8 : vector<1x32xf32> to vector<16x32xf32>
    %80 = arith.mulf %78, %79 : vector<16x32xf32>
    %81 = vector.broadcast %9 : vector<1x32xf32> to vector<16x32xf32>
    %82 = arith.addf %80, %81 : vector<16x32xf32>
    %83 = arith.truncf %82 : vector<16x32xf32> to vector<16x32xbf16>
    %c0_16 = arith.constant 0 : index
    %c0_17 = arith.constant 0 : index
    %c0_18 = arith.constant 0 : index
    %84 = vector.load %arg2[%c0_16, %c0_17, %c0_18] : memref<2x32x64xbf16, #tpu.memory_space<vmem>>, vector<1x32x64xbf16>
    %85 = vector.shape_cast %84 : vector<1x32x64xbf16> to vector<32x64xbf16>
    %cst_19 = arith.constant dense<0.000000e+00> : vector<16x64xf32>
    %86 = tpu.matmul %83, %85, %cst_19 {dimension_numbers = #tpu.dot_dimension_numbers<[1], [0], [0], [1], [0, 0, 1, 1], [], []>} : vector<16x32xbf16>, vector<32x64xbf16>, vector<16x64xf32> -> vector<16x64xf32>
    %87 = vector.broadcast %12 : vector<1x64xf32> to vector<16x64xf32>
    %88 = arith.addf %86, %87 : vector<16x64xf32>
    %cst_20 = arith.constant 0.000000e+00 : f32
    %89 = vector.broadcast %cst_20 : f32 to vector<16x64xf32>
    %90 = arith.maximumf %88, %89 : vector<16x64xf32>
    %91 = arith.truncf %90 : vector<16x64xf32> to vector<16x64xbf16>
    %c0_21 = arith.constant 0 : index
    %c0_22 = arith.constant 0 : index
    %c0_23 = arith.constant 0 : index
    %92 = vector.load %arg3[%c0_21, %c0_22, %c0_23] : memref<2x64x32xbf16, #tpu.memory_space<vmem>>, vector<1x64x32xbf16>
    %93 = vector.shape_cast %92 : vector<1x64x32xbf16> to vector<64x32xbf16>
    %cst_24 = arith.constant dense<0.000000e+00> : vector<16x32xf32>
    %94 = tpu.matmul %91, %93, %cst_24 {dimension_numbers = #tpu.dot_dimension_numbers<[1], [0], [0], [1], [0, 0, 1, 1], [], []>} : vector<16x64xbf16>, vector<64x32xbf16>, vector<16x32xf32> -> vector<16x32xf32>
    %95 = vector.broadcast %13 : vector<1x32xf32> to vector<16x32xf32>
    %96 = arith.addf %94, %95 : vector<16x32xf32>
    %97 = arith.addf %82, %96 : vector<16x32xf32>
    %cst_25 = arith.constant dense<0.000000e+00> : vector<16xf32>
    %98 = vector.multi_reduction <add>, %97, %cst_25 [1] : vector<16x32xf32> to vector<16xf32>
    %99 = vector.shape_cast %98 : vector<16xf32> to vector<16x1xf32>
    %cst_26 = arith.constant 3.200000e+01 : f32
    %100 = vector.broadcast %cst_26 : f32 to vector<16x1xf32>
    %101 = arith.divf %99, %100 : vector<16x1xf32>
    %102 = vector.broadcast %101 : vector<16x1xf32> to vector<16x32xf32>
    %103 = arith.subf %97, %102 : vector<16x32xf32>
    %104 = arith.mulf %103, %103 : vector<16x32xf32>
    %cst_27 = arith.constant dense<0.000000e+00> : vector<16xf32>
    %105 = vector.multi_reduction <add>, %104, %cst_27 [1] : vector<16x32xf32> to vector<16xf32>
    %106 = vector.shape_cast %105 : vector<16xf32> to vector<16x1xf32>
    %cst_28 = arith.constant 3.200000e+01 : f32
    %107 = vector.broadcast %cst_28 : f32 to vector<16x1xf32>
    %108 = arith.divf %106, %107 : vector<16x1xf32>
    %109 = vector.broadcast %101 : vector<16x1xf32> to vector<16x32xf32>
    %110 = arith.subf %97, %109 : vector<16x32xf32>
    %cst_29 = arith.constant 9.99999974E-6 : f32
    %111 = vector.broadcast %cst_29 : f32 to vector<16x1xf32>
    %112 = arith.addf %108, %111 : vector<16x1xf32>
    %113 = math.rsqrt %112 : vector<16x1xf32>
    %114 = vector.broadcast %113 : vector<16x1xf32> to vector<16x32xf32>
    %115 = arith.mulf %110, %114 : vector<16x32xf32>
    %116 = vector.broadcast %10 : vector<1x32xf32> to vector<16x32xf32>
    %117 = arith.mulf %115, %116 : vector<16x32xf32>
    %118 = vector.broadcast %11 : vector<1x32xf32> to vector<16x32xf32>
    %119 = arith.addf %117, %118 : vector<16x32xf32>
    %c1 = arith.constant 1 : index
    %c0_30 = arith.constant 0 : index
    %c0_31 = arith.constant 0 : index
    %120 = vector.load %arg1[%c1, %c0_30, %c0_31] : memref<2x32x128xbf16, #tpu.memory_space<vmem>>, vector<1x32x128xbf16>
    %121 = vector.shape_cast %120 : vector<1x32x128xbf16> to vector<32x128xbf16>
    %122 = vector.extract_strided_slice %121 {offsets = [0, 0], sizes = [32, 96], strides = [1, 1]} : vector<32x128xbf16> to vector<32x96xbf16>
    %123 = vector.extract_strided_slice %121 {offsets = [0, 96], sizes = [32, 32], strides = [1, 1]} : vector<32x128xbf16> to vector<32x32xbf16>
    %c8 = arith.constant 8 : index
    %c0_32 = arith.constant 0 : index
    %124 = vector.load %arg4[%c8, %c0_32] : memref<18x128xf32, #tpu.memory_space<vmem>>, vector<8x128xf32>
    %125 = vector.extract_strided_slice %124 {offsets = [0, 0], sizes = [1, 96], strides = [1, 1]} : vector<8x128xf32> to vector<1x96xf32>
    %126 = vector.extract_strided_slice %124 {offsets = [1, 0], sizes = [1, 32], strides = [1, 1]} : vector<8x128xf32> to vector<1x32xf32>
    %127 = vector.extract_strided_slice %124 {offsets = [2, 0], sizes = [1, 32], strides = [1, 1]} : vector<8x128xf32> to vector<1x32xf32>
    %128 = vector.extract_strided_slice %124 {offsets = [3, 0], sizes = [1, 32], strides = [1, 1]} : vector<8x128xf32> to vector<1x32xf32>
    %129 = vector.extract_strided_slice %124 {offsets = [4, 0], sizes = [1, 32], strides = [1, 1]} : vector<8x128xf32> to vector<1x32xf32>
    %130 = vector.extract_strided_slice %124 {offsets = [5, 0], sizes = [1, 32], strides = [1, 1]} : vector<8x128xf32> to vector<1x32xf32>
    %131 = vector.extract_strided_slice %124 {offsets = [6, 0], sizes = [1, 64], strides = [1, 1]} : vector<8x128xf32> to vector<1x64xf32>
    %132 = vector.extract_strided_slice %124 {offsets = [7, 0], sizes = [1, 32], strides = [1, 1]} : vector<8x128xf32> to vector<1x32xf32>
    %133 = arith.truncf %119 : vector<16x32xf32> to vector<16x32xbf16>
    %cst_33 = arith.constant dense<0.000000e+00> : vector<16x96xf32>
    %134 = tpu.matmul %133, %122, %cst_33 {dimension_numbers = #tpu.dot_dimension_numbers<[1], [0], [0], [1], [0, 0, 1, 1], [], []>} : vector<16x32xbf16>, vector<32x96xbf16>, vector<16x96xf32> -> vector<16x96xf32>
    %135 = vector.broadcast %125 : vector<1x96xf32> to vector<16x96xf32>
    %136 = arith.addf %134, %135 : vector<16x96xf32>
    %137 = vector.extract_strided_slice %136 {offsets = [0, 0], sizes = [16, 24], strides = [1, 1]} : vector<16x96xf32> to vector<16x24xf32>
    %138 = vector.shape_cast %137 : vector<16x24xf32> to vector<2x8x24xf32>
    %139 = vector.extract_strided_slice %136 {offsets = [0, 24], sizes = [16, 24], strides = [1, 1]} : vector<16x96xf32> to vector<16x24xf32>
    %140 = vector.shape_cast %139 : vector<16x24xf32> to vector<2x8x24xf32>
    %141 = vector.extract_strided_slice %136 {offsets = [0, 48], sizes = [16, 24], strides = [1, 1]} : vector<16x96xf32> to vector<16x24xf32>
    %142 = vector.shape_cast %141 : vector<16x24xf32> to vector<2x8x24xf32>
    %143 = vector.extract_strided_slice %136 {offsets = [0, 72], sizes = [16, 24], strides = [1, 1]} : vector<16x96xf32> to vector<16x24xf32>
    %144 = vector.shape_cast %143 : vector<16x24xf32> to vector<2x8x24xf32>
    %145 = tpu.concatenate %138, %140, %142, %144 in 0 : vector<2x8x24xf32>, vector<2x8x24xf32>, vector<2x8x24xf32>, vector<2x8x24xf32> -> vector<8x8x24xf32>
    %146 = vector.extract_strided_slice %145 {offsets = [0, 0, 0], sizes = [8, 8, 8], strides = [1, 1, 1]} : vector<8x8x24xf32> to vector<8x8x8xf32>
    %147 = arith.truncf %146 : vector<8x8x8xf32> to vector<8x8x8xbf16>
    %148 = vector.extract_strided_slice %145 {offsets = [0, 0, 8], sizes = [8, 8, 8], strides = [1, 1, 1]} : vector<8x8x24xf32> to vector<8x8x8xf32>
    %149 = arith.truncf %148 : vector<8x8x8xf32> to vector<8x8x8xbf16>
    %150 = vector.extract_strided_slice %145 {offsets = [0, 0, 16], sizes = [8, 8, 8], strides = [1, 1, 1]} : vector<8x8x24xf32> to vector<8x8x8xf32>
    %151 = arith.truncf %150 : vector<8x8x8xf32> to vector<8x8x8xbf16>
    "tpu.trace_start"() <{level = 10 : i32, message = "bqd,bkd->bqk"}> : () -> ()
    %cst_34 = arith.constant dense<0.000000e+00> : vector<8x8x8xf32>
    %152 = tpu.matmul %147, %149, %cst_34 {dimension_numbers = #tpu.dot_dimension_numbers<[2], [2], [1], [1], [0, 0, 0, 1, 1, 1], [0], [0]>} : vector<8x8x8xbf16>, vector<8x8x8xbf16>, vector<8x8x8xf32> -> vector<8x8x8xf32>
    "tpu.trace_stop"() : () -> ()
    %cst_35 = arith.constant dense<0xFF800000> : vector<8x8xf32>
    %153 = vector.multi_reduction <maximumf>, %152, %cst_35 [2] : vector<8x8x8xf32> to vector<8x8xf32>
    %154 = vector.shape_cast %153 : vector<8x8xf32> to vector<8x8x1xf32>
    %155 = vector.broadcast %154 : vector<8x8x1xf32> to vector<8x8x8xf32>
    %156 = arith.subf %152, %155 : vector<8x8x8xf32>
    %157 = math.exp %156 : vector<8x8x8xf32>
    %cst_36 = arith.constant dense<0.000000e+00> : vector<8x8xf32>
    %158 = vector.multi_reduction <add>, %157, %cst_36 [2] : vector<8x8x8xf32> to vector<8x8xf32>
    %159 = vector.shape_cast %158 : vector<8x8xf32> to vector<8x8x1xf32>
    %160 = tpu.reciprocal %159 {approx = true} : vector<8x8x1xf32> -> vector<8x8x1xf32>
    %161 = vector.broadcast %160 : vector<8x8x1xf32> to vector<8x8x8xf32>
    %162 = arith.mulf %157, %161 : vector<8x8x8xf32>
    %163 = arith.truncf %162 : vector<8x8x8xf32> to vector<8x8x8xbf16>
    "tpu.trace_start"() <{level = 10 : i32, message = "bqk,bkd->bqd"}> : () -> ()
    %cst_37 = arith.constant dense<0.000000e+00> : vector<8x8x8xf32>
    %164 = tpu.matmul %163, %151, %cst_37 {dimension_numbers = #tpu.dot_dimension_numbers<[2], [1], [1], [2], [0, 0, 0, 1, 1, 2], [0], [0]>} : vector<8x8x8xbf16>, vector<8x8x8xbf16>, vector<8x8x8xf32> -> vector<8x8x8xf32>
    "tpu.trace_stop"() : () -> ()
    %165 = vector.shape_cast %164 : vector<8x8x8xf32> to vector<4x16x8xf32>
    %166 = vector.extract_strided_slice %165 {offsets = [0, 0, 0], sizes = [1, 16, 8], strides = [1, 1, 1]} : vector<4x16x8xf32> to vector<1x16x8xf32>
    %167 = vector.shape_cast %166 : vector<1x16x8xf32> to vector<16x8xf32>
    %168 = vector.extract_strided_slice %165 {offsets = [1, 0, 0], sizes = [1, 16, 8], strides = [1, 1, 1]} : vector<4x16x8xf32> to vector<1x16x8xf32>
    %169 = vector.shape_cast %168 : vector<1x16x8xf32> to vector<16x8xf32>
    %170 = vector.extract_strided_slice %165 {offsets = [2, 0, 0], sizes = [1, 16, 8], strides = [1, 1, 1]} : vector<4x16x8xf32> to vector<1x16x8xf32>
    %171 = vector.shape_cast %170 : vector<1x16x8xf32> to vector<16x8xf32>
    %172 = vector.extract_strided_slice %165 {offsets = [3, 0, 0], sizes = [1, 16, 8], strides = [1, 1, 1]} : vector<4x16x8xf32> to vector<1x16x8xf32>
    %173 = vector.shape_cast %172 : vector<1x16x8xf32> to vector<16x8xf32>
    %174 = tpu.concatenate %167, %169, %171, %173 in 1 : vector<16x8xf32>, vector<16x8xf32>, vector<16x8xf32>, vector<16x8xf32> -> vector<16x32xf32>
    %175 = arith.truncf %174 : vector<16x32xf32> to vector<16x32xbf16>
    %cst_38 = arith.constant dense<0.000000e+00> : vector<16x32xf32>
    %176 = tpu.matmul %175, %123, %cst_38 {dimension_numbers = #tpu.dot_dimension_numbers<[1], [0], [0], [1], [0, 0, 1, 1], [], []>} : vector<16x32xbf16>, vector<32x32xbf16>, vector<16x32xf32> -> vector<16x32xf32>
    %177 = vector.broadcast %126 : vector<1x32xf32> to vector<16x32xf32>
    %178 = arith.addf %176, %177 : vector<16x32xf32>
    %179 = arith.addf %119, %178 : vector<16x32xf32>
    %cst_39 = arith.constant dense<0.000000e+00> : vector<16xf32>
    %180 = vector.multi_reduction <add>, %179, %cst_39 [1] : vector<16x32xf32> to vector<16xf32>
    %181 = vector.shape_cast %180 : vector<16xf32> to vector<16x1xf32>
    %cst_40 = arith.constant 3.200000e+01 : f32
    %182 = vector.broadcast %cst_40 : f32 to vector<16x1xf32>
    %183 = arith.divf %181, %182 : vector<16x1xf32>
    %184 = vector.broadcast %183 : vector<16x1xf32> to vector<16x32xf32>
    %185 = arith.subf %179, %184 : vector<16x32xf32>
    %186 = arith.mulf %185, %185 : vector<16x32xf32>
    %cst_41 = arith.constant dense<0.000000e+00> : vector<16xf32>
    %187 = vector.multi_reduction <add>, %186, %cst_41 [1] : vector<16x32xf32> to vector<16xf32>
    %188 = vector.shape_cast %187 : vector<16xf32> to vector<16x1xf32>
    %cst_42 = arith.constant 3.200000e+01 : f32
    %189 = vector.broadcast %cst_42 : f32 to vector<16x1xf32>
    %190 = arith.divf %188, %189 : vector<16x1xf32>
    %191 = vector.broadcast %183 : vector<16x1xf32> to vector<16x32xf32>
    %192 = arith.subf %179, %191 : vector<16x32xf32>
    %cst_43 = arith.constant 9.99999974E-6 : f32
    %193 = vector.broadcast %cst_43 : f32 to vector<16x1xf32>
    %194 = arith.addf %190, %193 : vector<16x1xf32>
    %195 = math.rsqrt %194 : vector<16x1xf32>
    %196 = vector.broadcast %195 : vector<16x1xf32> to vector<16x32xf32>
    %197 = arith.mulf %192, %196 : vector<16x32xf32>
    %198 = vector.broadcast %127 : vector<1x32xf32> to vector<16x32xf32>
    %199 = arith.mulf %197, %198 : vector<16x32xf32>
    %200 = vector.broadcast %128 : vector<1x32xf32> to vector<16x32xf32>
    %201 = arith.addf %199, %200 : vector<16x32xf32>
    %202 = arith.truncf %201 : vector<16x32xf32> to vector<16x32xbf16>
    %c1_44 = arith.constant 1 : index
    %c0_45 = arith.constant 0 : index
    %c0_46 = arith.constant 0 : index
    %203 = vector.load %arg2[%c1_44, %c0_45, %c0_46] : memref<2x32x64xbf16, #tpu.memory_space<vmem>>, vector<1x32x64xbf16>
    %204 = vector.shape_cast %203 : vector<1x32x64xbf16> to vector<32x64xbf16>
    %cst_47 = arith.constant dense<0.000000e+00> : vector<16x64xf32>
    %205 = tpu.matmul %202, %204, %cst_47 {dimension_numbers = #tpu.dot_dimension_numbers<[1], [0], [0], [1], [0, 0, 1, 1], [], []>} : vector<16x32xbf16>, vector<32x64xbf16>, vector<16x64xf32> -> vector<16x64xf32>
    %206 = vector.broadcast %131 : vector<1x64xf32> to vector<16x64xf32>
    %207 = arith.addf %205, %206 : vector<16x64xf32>
    %cst_48 = arith.constant 0.000000e+00 : f32
    %208 = vector.broadcast %cst_48 : f32 to vector<16x64xf32>
    %209 = arith.maximumf %207, %208 : vector<16x64xf32>
    %210 = arith.truncf %209 : vector<16x64xf32> to vector<16x64xbf16>
    %c1_49 = arith.constant 1 : index
    %c0_50 = arith.constant 0 : index
    %c0_51 = arith.constant 0 : index
    %211 = vector.load %arg3[%c1_49, %c0_50, %c0_51] : memref<2x64x32xbf16, #tpu.memory_space<vmem>>, vector<1x64x32xbf16>
    %212 = vector.shape_cast %211 : vector<1x64x32xbf16> to vector<64x32xbf16>
    %cst_52 = arith.constant dense<0.000000e+00> : vector<16x32xf32>
    %213 = tpu.matmul %210, %212, %cst_52 {dimension_numbers = #tpu.dot_dimension_numbers<[1], [0], [0], [1], [0, 0, 1, 1], [], []>} : vector<16x64xbf16>, vector<64x32xbf16>, vector<16x32xf32> -> vector<16x32xf32>
    %214 = vector.broadcast %132 : vector<1x32xf32> to vector<16x32xf32>
    %215 = arith.addf %213, %214 : vector<16x32xf32>
    %216 = arith.addf %201, %215 : vector<16x32xf32>
    %cst_53 = arith.constant dense<0.000000e+00> : vector<16xf32>
    %217 = vector.multi_reduction <add>, %216, %cst_53 [1] : vector<16x32xf32> to vector<16xf32>
    %218 = vector.shape_cast %217 : vector<16xf32> to vector<16x1xf32>
    %cst_54 = arith.constant 3.200000e+01 : f32
    %219 = vector.broadcast %cst_54 : f32 to vector<16x1xf32>
    %220 = arith.divf %218, %219 : vector<16x1xf32>
    %221 = vector.broadcast %220 : vector<16x1xf32> to vector<16x32xf32>
    %222 = arith.subf %216, %221 : vector<16x32xf32>
    %223 = arith.mulf %222, %222 : vector<16x32xf32>
    %cst_55 = arith.constant dense<0.000000e+00> : vector<16xf32>
    %224 = vector.multi_reduction <add>, %223, %cst_55 [1] : vector<16x32xf32> to vector<16xf32>
    %225 = vector.shape_cast %224 : vector<16xf32> to vector<16x1xf32>
    %cst_56 = arith.constant 3.200000e+01 : f32
    %226 = vector.broadcast %cst_56 : f32 to vector<16x1xf32>
    %227 = arith.divf %225, %226 : vector<16x1xf32>
    %228 = vector.broadcast %220 : vector<16x1xf32> to vector<16x32xf32>
    %229 = arith.subf %216, %228 : vector<16x32xf32>
    %cst_57 = arith.constant 9.99999974E-6 : f32
    %230 = vector.broadcast %cst_57 : f32 to vector<16x1xf32>
    %231 = arith.addf %227, %230 : vector<16x1xf32>
    %232 = math.rsqrt %231 : vector<16x1xf32>
    %233 = vector.broadcast %232 : vector<16x1xf32> to vector<16x32xf32>
    %234 = arith.mulf %229, %233 : vector<16x32xf32>
    %235 = vector.broadcast %129 : vector<1x32xf32> to vector<16x32xf32>
    %236 = arith.mulf %234, %235 : vector<16x32xf32>
    %237 = vector.broadcast %130 : vector<1x32xf32> to vector<16x32xf32>
    %238 = arith.addf %236, %237 : vector<16x32xf32>
    %c16 = arith.constant 16 : index
    %c0_58 = arith.constant 0 : index
    %239 = vector.load %arg4[%c16, %c0_58] : memref<18x128xf32, #tpu.memory_space<vmem>>, vector<2x128xf32>
    %240 = vector.extract_strided_slice %239 {offsets = [0, 0], sizes = [1, 32], strides = [1, 1]} : vector<2x128xf32> to vector<1x32xf32>
    %241 = vector.extract_strided_slice %239 {offsets = [1, 0], sizes = [1, 32], strides = [1, 1]} : vector<2x128xf32> to vector<1x32xf32>
    %cst_59 = arith.constant dense<0.000000e+00> : vector<16xf32>
    %242 = vector.multi_reduction <add>, %238, %cst_59 [1] : vector<16x32xf32> to vector<16xf32>
    %243 = vector.shape_cast %242 : vector<16xf32> to vector<16x1xf32>
    %cst_60 = arith.constant 3.200000e+01 : f32
    %244 = vector.broadcast %cst_60 : f32 to vector<16x1xf32>
    %245 = arith.divf %243, %244 : vector<16x1xf32>
    %246 = vector.broadcast %245 : vector<16x1xf32> to vector<16x32xf32>
    %247 = arith.subf %238, %246 : vector<16x32xf32>
    %248 = arith.mulf %247, %247 : vector<16x32xf32>
    %cst_61 = arith.constant dense<0.000000e+00> : vector<16xf32>
    %249 = vector.multi_reduction <add>, %248, %cst_61 [1] : vector<16x32xf32> to vector<16xf32>
    %250 = vector.shape_cast %249 : vector<16xf32> to vector<16x1xf32>
    %cst_62 = arith.constant 3.200000e+01 : f32
    %251 = vector.broadcast %cst_62 : f32 to vector<16x1xf32>
    %252 = arith.divf %250, %251 : vector<16x1xf32>
    %253 = vector.broadcast %245 : vector<16x1xf32> to vector<16x32xf32>
    %254 = arith.subf %238, %253 : vector<16x32xf32>
    %cst_63 = arith.constant 9.99999974E-6 : f32
    %255 = vector.broadcast %cst_63 : f32 to vector<16x1xf32>
    %256 = arith.addf %252, %255 : vector<16x1xf32>
    %257 = math.rsqrt %256 : vector<16x1xf32>
    %258 = vector.broadcast %257 : vector<16x1xf32> to vector<16x32xf32>
    %259 = arith.mulf %254, %258 : vector<16x32xf32>
    %260 = vector.broadcast %240 : vector<1x32xf32> to vector<16x32xf32>
    %261 = arith.mulf %259, %260 : vector<16x32xf32>
    %262 = vector.broadcast %241 : vector<1x32xf32> to vector<16x32xf32>
    %263 = arith.addf %261, %262 : vector<16x32xf32>
    %c0_64 = arith.constant 0 : index
    %c0_65 = arith.constant 0 : index
    %264 = vector.load %arg5[%c0_64, %c0_65] : memref<16x32xf32, #tpu.memory_space<vmem>>, vector<16x32xf32>
    tpu.vector_store %arg5[%c0_64, %c0_65], %263 {strides = array<i32>} : memref<16x32xf32, #tpu.memory_space<vmem>>, vector<16x32xf32>,
    return
  }
}

</mosaic_0001>

<bundles_post_ra>
// kernel: tpu_custom_call.1
= control target key start
LH: loop header
LB: loop body
LE: loop exit
PB: predicated region body
PF: predicated region fallthrough
CT: control target
= control target key end

     0   :  { %10 = vsyncpa [#allocation3], 0  ;;  %s2432_s0 = inlined_call_operand.hbm [shape: f32[16,32], index: 0, kind: input, shape index: {}]   ;;  %s2433_s1 = inlined_call_operand.vmem [shape: bf16[2,32,128], index: 1, kind: input, shape index: {}]   ;;  %s2434_s2 = inlined_call_operand.vmem [shape: bf16[2,32,64], index: 2, kind: input, shape index: {}]   ;;  %s2435_s3 = inlined_call_operand.vmem [shape: bf16[2,64,32], index: 3, kind: input, shape index: {}]   ;;  %s2436_s4 = inlined_call_operand.vmem [shape: f32[18,128], index: 4, kind: input, shape index: {}]   ;;  %s2437_s5 = inlined_call_operand.hbm [shape: f32[16,32], index: 5, kind: output, shape index: {}]  }
   0x1   :  { %11 = vsyncpa [#allocation4], 0  ;;  %s16_s20 = sshll.u32 %s2432_s0, 4  ;;  %s1979_s21 = smov [#allocation2]   ;;  %s17_s20 = int_to_ptr.hbm [resolvable:$true] %s16_s20 }
   0x2   :  { %s18_s22 = sshll.u32 %s1979_s21, 4  ;;  %s1980_s23 = smov 128   ;;  %s19_s22 = int_to_ptr.vmem [resolvable:$true] %s18_s22 }
   0x3   :  { %s1981_s24 = smov 8  }
   0x4   :  { %24 = dma.hbm_to_vmem [thread:$0]  %s17_s20, 256, %s19_s22, [#allocation3], %s1980_s23, %s1980_s23, %s1981_s24  }
   0x5   :  { %1975 = dma.done.wait [#allocation3], 256  }
   0x6   :  { %1976 = vsyncadd [#allocation3], 4294967040  ;;  %v2031_v0 = vld [vmem:[%s2433_s1 + $0x8] sm:$0xff]  ;;  %v2037_v1 = vld [vmem:[%s2433_s1] sm:$0xff]  ;;  %vm59_vm0 = vcmask 261120   ;;  %s1982_s30 = smov 80  }
   0x7   :  { %69 = vmatpush.bf16.msra.mxu0 %v2031_v0  ;;  %v2039_v2 = vld [vmem:[#allocation2] sm:$0xff]  ;;  %v2041_v3 = vld [vmem:[#allocation2 + $0x8] sm:$0xff]  ;;  %s1983_s6 = smov 104   ;;  %s1984_s7 = smov 56   ;;  %vm110_vm1 = vcmask 64512   ;;  %vm399_vm2 = vcmask 1043456  }
   0x8   :  { %v45_v4 = vpack.c.bf16 %v2041_v3, %v2039_v2  ;;  %v2050_v5 = vld [vmem:[%s2436_s4] sm:$0xff]  ;;  %s1985_s8 = smov 120   ;;  %s1986_s9 = smov 112   ;;  %vm589_vm3 = vcmask 130048   ;;  %vm592_vm4 = vcmask 195584   ;;  %vm750_vm12 = vcmask 523264  }
   0x9   :  { %v46_v6 = vperm.slane %v2050_v5, 0  ;;  %s1987_s10 = smov 32   ;;  %s1988_s11 = smov 16  }
   0xa   :  { %s1989_s12 = smov 24   ;;  %s1649_s21 = sshll.u32 %s2437_s5, 4  ;;  %s1650_s21 = int_to_ptr.hbm [resolvable:$true] %s1649_s21 }
   0xb   :  { %70 = vmatpush.bf16.msra.mxu0 %v2037_v1 }
   0xe   :  { %1670 = vmatmul.msk.bf16.vlgmr.msra.gmra.mxu0 %vm59_vm0, %v45_v4 }
  0x8b   :  { %v72_v7 = vpop.f32.mrf.mxu0 }
  0x8c   :  { %v73_v8 = vadd.f32 %v72_v7, %v46_v6 }
  0x8e   :  { %85 = vrot.lane.b32.xlu2 %v73_v8, %s1982_s30  ;;  %79 = vrot.lane.b32.xlu0 %v73_v8, %s1983_s6  ;;  %v97_v11 = vpack.c.bf16 %v73_v8, %v73_v8 }
  0x90   :  { %v106_v13 = vunpack.c.l.b16 %v97_v11 }
  0x92   :  { %v107_v15 = vpack.c.b16 %v106_v13, %v106_v13 }
  0x93   :  { %v74_v9 = vpop.f32.mrf.mxu0 }
  0x94   :  { %v75_v10 = vadd.f32 %v74_v9, %v46_v6 }
  0x96   :  { %87 = vrot.lane.b32.xlu1 %v75_v10, %s1982_s30  ;;  %93 = vrot.lane.b32.xlu2 %v75_v10, %s1984_s7  ;;  %v98_v12 = vpack.c.bf16 %v75_v10, %v75_v10 }
  0x97   :  { %81 = vrot.lane.b32.xlu0 %v75_v10, %s1983_s6 }
  0x98   :  { %v131_v14 = vunpack.c.l.b16 %v98_v12 }
  0x9a   :  { %v132_v16 = vpack.c.b16 %v131_v14, %v131_v14 }
  0x9e   :  { %91 = vrot.lane.b32.xlu1 %v73_v8, %s1984_s7  ;;  %108 = vrot.lane.b32.xlu2 %v107_v15, %s1985_s8 }
  0x9f   :  { %133 = vrot.lane.b32.xlu0 %v132_v16, %s1985_s8 }
  0xe8   :  { %v86_v17 = vpop.permute.xlu2 %85 }
  0xe9   :  { %v101_v33 = vpack.c.bf16 %v86_v17, %v86_v17 }
  0xeb   :  { %v203_v39 = vunpack.c.l.b16 %v101_v33 }
  0xed   :  { %v2077_v44 = vpack.c.b16 %v203_v39, %v203_v39 }
  0xf0   :  { %v94_v18 = vpop.permute.xlu2 %93 }
  0xf1   :  { %v2064_v31 = vpack.c.bf16 %v94_v18, %v94_v18 }
  0xf3   :  { %v275_v36 = vunpack.c.l.b16 %v2064_v31 }
  0xf5   :  { %v2073_v42 = vpack.c.b16 %v275_v36, %v275_v36 }
  0xf8   :  { %v109_v19 = vpop.permute.xlu2 %108 }
  0xf9   :  { %v115_v20 = vsel %vm110_vm1, %v109_v19, 0 }
  0xfa   :  { %124 = vmatpush.bf16.xpose.msra.mxu1 %v115_v20 }
 0x100   :  { %v80_v21 = vpop.permute.xlu0 %79 }
 0x101   :  { %v99_v22 = vpack.c.bf16 %v80_v21, %v80_v21  ;;  %1671 = vmatmul.msk.bf16.vlgmr.msra.gmra.mxu1 %vm110_vm1, %v97_v11 }
 0x103   :  { %v155_v23 = vunpack.c.l.b16 %v99_v22 }
 0x105   :  { %v156_v24 = vpack.c.b16 %v155_v23, %v155_v23 }
 0x107   :  { %157 = vrot.lane.b32.xlu1 %v156_v24, %s1985_s8 }
 0x108   :  { %v88_v25 = vpop.permute.xlu1 %87 }
 0x109   :  { %v102_v26 = vpack.c.bf16 %v88_v25, %v88_v25  ;;  %v82_v27 = vpop.permute.xlu0 %81 }
 0x10a   :  { %v100_v28 = vpack.c.bf16 %v82_v27, %v82_v27 }
 0x10b   :  { %v227_v29 = vunpack.c.l.b16 %v102_v26 }
 0x10c   :  { %v179_v30 = vunpack.c.l.b16 %v100_v28 }
 0x10d   :  { %v2066_v32 = vpack.c.b16 %v227_v29, %v227_v29 }
 0x10e   :  { %v180_v34 = vpack.c.b16 %v179_v30, %v179_v30 }
 0x10f   :  { %229 = vrot.lane.b32.xlu1 %v2066_v32, %s1985_s8 }
 0x110   :  { %181 = vrot.lane.b32.xlu0 %v180_v34, %s1985_s8  ;;  %v92_v35 = vpop.permute.xlu1 %91 }
 0x111   :  { %v103_v37 = vpack.c.bf16 %v92_v35, %v92_v35  ;;  %v134_v38 = vpop.permute.xlu0 %133 }
 0x112   :  { %v139_v40 = vsel %vm110_vm1, %v134_v38, 0 }
 0x113   :  { %v251_v41 = vunpack.c.l.b16 %v103_v37  ;;  %148 = vmatpush.bf16.xpose.msra.mxu2 %v139_v40 }
 0x115   :  { %v2075_v43 = vpack.c.b16 %v251_v41, %v251_v41 }
 0x117   :  { %277 = vrot.lane.b32.xlu1 %v2073_v42, %s1985_s8  ;;  %253 = vrot.lane.b32.xlu2 %v2075_v43, %s1985_s8 }
 0x118   :  { %205 = vrot.lane.b32.xlu0 %v2077_v44, %s1985_s8 }
 0x11a   :  { %1672 = vmatmul.msk.bf16.vlgmr.msra.gmra.mxu2 %vm110_vm1, %v98_v12 }
 0x11f   :  { %416 = vrot.lane.b32.xlu1 %v132_v16, %s1986_s9  ;;  %437 = vrot.lane.b32.xlu2 %v156_v24, %s1986_s9 }
 0x120   :  { %394 = vrot.lane.b32.xlu0 %v107_v15, %s1986_s9 }
 0x171   :  { %v254_v45 = vpop.permute.xlu2 %253 }
 0x172   :  { %v259_v48 = vsel %vm110_vm1, %v254_v45, 0 }
 0x179   :  { %v158_v46 = vpop.permute.xlu1 %157  ;;  %v438_v50 = vpop.permute.xlu2 %437 }
 0x17a   :  { %v163_v47 = vsel %vm110_vm1, %v158_v46, 0  ;;  %v443_v53 = vsel %vm399_vm2, %v438_v50, 0 }
 0x17b   :  { %172 = vmatpush.bf16.xpose.msra.mxu3 %v163_v47 }
 0x17e   :  { %v126_v49 = vpop.f32.mrf.mxu1 }
 0x17f   :  { %v298_v51 = vsel %vm110_vm1, %v126_v49, -inf }
 0x180   :  { %299 = vmax.xlane.f32.xlu1 %v298_v51 }
 0x181   :  { %v230_v52 = vpop.permute.xlu1 %229 }
 0x182   :  { %v182_v54 = vpop.permute.xlu0 %181  ;;  %1673 = vmatmul.msk.bf16.vlgmr.msra.gmra.mxu3 %vm110_vm1, %v99_v22  ;;  %v235_v55 = vsel %vm110_vm1, %v230_v52, 0 }
 0x183   :  { %268 = vmatpush.bf16.xpose.msrb.mxu3 %v259_v48  ;;  %v187_v56 = vsel %vm110_vm1, %v182_v54, 0  ;;  %244 = vmatpush.bf16.xpose.msrb.mxu2 %v235_v55 }
 0x184   :  { %196 = vmatpush.bf16.xpose.msrb.mxu0 %v187_v56 }
 0x186   :  { %v128_v57 = vpop.f32.mrf.mxu1 }
 0x189   :  { %v278_v58 = vpop.permute.xlu1 %277 }
 0x18a   :  { %v283_v59 = vsel %vm110_vm1, %v278_v58, 0  ;;  %v206_v60 = vpop.permute.xlu0 %205  ;;  %1676 = vmatmul.msk.bf16.vlgmr.msrb.gmra.mxu2 %vm110_vm1, %v102_v26 }
 0x18b   :  { %452 = vmatpush.bf16.msra.mxu3 %v443_v53  ;;  %1674 = vmatmul.msk.bf16.vlgmr.msrb.gmra.mxu0 %vm110_vm1, %v100_v28  ;;  %v211_v61 = vsel %vm110_vm1, %v206_v60, 0 }
 0x18c   :  { %220 = vmatpush.bf16.xpose.msrb.mxu1 %v211_v61  ;;  %292 = vmatpush.bf16.xpose.msra.mxu0 %v283_v59 }
 0x191   :  { %v417_v62 = vpop.permute.xlu1 %416 }
 0x192   :  { %v422_v63 = vsel %vm399_vm2, %v417_v62, 0  ;;  %v395_v4 = vpop.permute.xlu0 %394  ;;  %1677 = vmatmul.msk.bf16.vlgmr.msrb.gmra.mxu3 %vm110_vm1, %v103_v37 }
 0x193   :  { %v401_v6 = vsel %vm399_vm2, %v395_v4, 0  ;;  %1675 = vmatmul.msk.bf16.vlgmr.msrb.gmra.mxu1 %vm110_vm1, %v101_v33  ;;  %431 = vmatpush.bf16.msra.mxu2 %v422_v63 }
 0x194   :  { %410 = vmatpush.bf16.msra.mxu1 %v401_v6 }
 0x199   :  { %458 = vrot.lane.b32.xlu1 %v180_v34, %s1986_s9 }
 0x19b   :  { %1678 = vmatmul.msk.bf16.vlgmr.msra.gmra.mxu0 %vm110_vm1, %v2064_v31 }
 0x19d   :  { %v150_v7 = vpop.f32.mrf.mxu2 }
 0x19e   :  { %v301_v8 = vsel %vm110_vm1, %v150_v7, -inf }
 0x19f   :  { %302 = vmax.xlane.f32.xlu2 %v301_v8 }
 0x1a5   :  { %v152_v9 = vpop.f32.mrf.mxu2 }
 0x1f3   :  { %v300_v10 = vpop.xlane.xlu1 %299 }
 0x1f4   :  { %v322_v11 = vsub.f32 %v126_v49, %v300_v10 }
 0x1f6   :  { %v330_v12 = vmul.f32 1.442695, %v322_v11 }
 0x1f8   :  { %1841 = vpow2.f32 %v330_v12 }
 0x1fe   :  { %v1842_v21 = vpop.eup %1841 }
 0x1ff   :  { %v346_v24 = vsel %vm110_vm1, %v1842_v21, 0.0 }
 0x205   :  { %v174_v13 = vpop.f32.mrf.mxu3 }
 0x206   :  { %v304_v14 = vsel %vm110_vm1, %v174_v13, -inf }
 0x207   :  { %305 = vmax.xlane.f32.xlu0 %v304_v14 }
 0x208   :  { %v198_v15 = vpop.f32.mrf.mxu0 }
 0x209   :  { %v307_v16 = vsel %vm110_vm1, %v198_v15, -inf }
 0x20a   :  { %308 = vmax.xlane.f32.xlu2 %v307_v16 }
 0x20b   :  { %v459_v17 = vpop.permute.xlu1 %458 }
 0x20c   :  { %v464_v18 = vsel %vm399_vm2, %v459_v17, 0 }
 0x20d   :  { %v176_v19 = vpop.f32.mrf.mxu3  ;;  %v246_v20 = vpop.f32.mrf.mxu2  ;;  %473 = vmatpush.bf16.msrb.mxu0 %v464_v18 }
 0x20e   :  { %v313_v35 = vsel %vm110_vm1, %v246_v20, -inf }
 0x210   :  { %v200_v22 = vpop.f32.mrf.mxu0  ;;  %v222_v23 = vpop.f32.mrf.mxu1 }
 0x211   :  { %v310_v25 = vsel %vm110_vm1, %v222_v23, -inf }
 0x212   :  { %347 = vadd.xlane.f32.xlu2 %v346_v24  ;;  %311 = vmax.xlane.f32.xlu1 %v310_v25  ;;  %v303_v26 = vpop.xlane.xlu2 %302 }
 0x213   :  { %v323_v27 = vsub.f32 %v150_v7, %v303_v26 }
 0x215   :  { %v332_v28 = vmul.f32 1.442695, %v323_v27  ;;  %v248_v29 = vpop.f32.mrf.mxu2  ;;  %v270_v30 = vpop.f32.mrf.mxu3 }
 0x216   :  { %v316_v31 = vsel %vm110_vm1, %v270_v30, -inf }
 0x217   :  { %1843 = vpow2.f32 %v332_v28  ;;  %317 = vmax.xlane.f32.xlu0 %v316_v31 }
 0x218   :  { %v224_v33 = vpop.f32.mrf.mxu1  ;;  %v294_v34 = vpop.f32.mrf.mxu0 }
 0x219   :  { %v319_v40 = vsel %vm110_vm1, %v294_v34, -inf }
 0x21a   :  { %314 = vmax.xlane.f32.xlu2 %v313_v35 }
 0x21d   :  { %v1844_v36 = vpop.eup %1843  ;;  %v272_v37 = vpop.f32.mrf.mxu3 }
 0x21e   :  { %v349_v38 = vsel %vm110_vm1, %v1844_v36, 0.0 }
 0x21f   :  { %350 = vadd.xlane.f32.xlu0 %v349_v38 }
 0x220   :  { %v296_v39 = vpop.f32.mrf.mxu0 }
 0x222   :  { %320 = vmax.xlane.f32.xlu2 %v319_v40 }
 0x23a   :  { %500 = vrot.lane.b32.xlu2 %v2066_v32, %s1986_s9 }
 0x27a   :  { %v306_v47 = vpop.xlane.xlu0 %305 }
 0x27b   :  { %v324_v52 = vsub.f32 %v174_v13, %v306_v47 }
 0x27d   :  { %v309_v41 = vpop.xlane.xlu2 %308  ;;  %v334_v32 = vmul.f32 1.442695, %v324_v52 }
 0x27e   :  { %v325_v45 = vsub.f32 %v198_v15, %v309_v41 }
 0x280   :  { %v336_v46 = vmul.f32 1.442695, %v325_v45 }
 0x282   :  { %1845 = vpow2.f32 %v336_v46 }
 0x285   :  { %v312_v48 = vpop.xlane.xlu1 %311  ;;  %v348_v49 = vpop.xlane.xlu2 %347 }
 0x286   :  { %v326_v50 = vsub.f32 %v222_v23, %v312_v48  ;;  %1847 = vrcp.f32 %v348_v49 }
 0x288   :  { %v1846_v51 = vpop.eup %1845  ;;  %v338_v53 = vmul.f32 1.442695, %v326_v50 }
 0x289   :  { %v355_v54 = vsel %vm110_vm1, %v1846_v51, 0.0 }
 0x28a   :  { %1849 = vpow2.f32 %v338_v53  ;;  %356 = vadd.xlane.f32.xlu0 %v355_v54  ;;  %v318_v55 = vpop.xlane.xlu0 %317 }
 0x28b   :  { %v328_v56 = vsub.f32 %v270_v30, %v318_v55 }
 0x28c   :  { %v1848_v57 = vpop.eup %1847 }
 0x28d   :  { %v378_v58 = vmul.f32 %v1848_v57, %v1842_v21  ;;  %v342_v59 = vmul.f32 1.442695, %v328_v56  ;;  %v315_v60 = vpop.xlane.xlu2 %314 }
 0x28e   :  { %v327_v61 = vsub.f32 %v246_v20, %v315_v60 }
 0x28f   :  { %v386_v62 = vpack.c.bf16 %v378_v58, %v378_v58  ;;  %1851 = vpow2.f32 %v342_v59 }
 0x290   :  { %v2120_v63 = vpop.eup %1849  ;;  %1853 = vpow2.f32 %v334_v32  ;;  %v340_v4 = vmul.f32 1.442695, %v327_v61 }
 0x291   :  { %1679 = vmatmul.msk.bf16.vlgmr.msra.gmra.mxu1 %vm110_vm1, %v386_v62  ;;  %v358_v6 = vsel %vm110_vm1, %v2120_v63, 0.0 }
 0x292   :  { %1855 = vpow2.f32 %v340_v4  ;;  %359 = vadd.xlane.f32.xlu1 %v358_v6  ;;  %v351_v7 = vpop.xlane.xlu0 %350 }
 0x293   :  { %1857 = vrcp.f32 %v351_v7 }
 0x295   :  { %v1852_v8 = vpop.eup %1851  ;;  %v321_v9 = vpop.xlane.xlu2 %320 }
 0x296   :  { %v1854_v10 = vpop.eup %1853  ;;  %v329_v11 = vsub.f32 %v294_v34, %v321_v9  ;;  %v364_v12 = vsel %vm110_vm1, %v1852_v8, 0.0 }
 0x297   :  { %365 = vadd.xlane.f32.xlu2 %v364_v12  ;;  %v352_v16 = vsel %vm110_vm1, %v1854_v10, 0.0 }
 0x298   :  { %v1856_v13 = vpop.eup %1855  ;;  %v344_v14 = vmul.f32 1.442695, %v329_v11 }
 0x299   :  { %v1858_v15 = vpop.eup %1857  ;;  %v361_v17 = vsel %vm110_vm1, %v1856_v13, 0.0 }
 0x29a   :  { %v379_v18 = vmul.f32 %v1858_v15, %v1844_v36  ;;  %1859 = vpow2.f32 %v344_v14  ;;  %353 = vadd.xlane.f32.xlu1 %v352_v16  ;;  %362 = vadd.xlane.f32.xlu0 %v361_v17 }
 0x29c   :  { %v387_v19 = vpack.c.bf16 %v379_v18, %v379_v18 }
 0x29d   :  { %v501_v20 = vpop.permute.xlu2 %500 }
 0x29e   :  { %v506_v21 = vsel %vm399_vm2, %v501_v20, 0  ;;  %1680 = vmatmul.msk.bf16.vlgmr.msra.gmra.mxu2 %vm110_vm1, %v387_v19 }
 0x29f   :  { %515 = vmatpush.bf16.msrb.mxu2 %v506_v21 }
 0x2a0   :  { %v1860_v22 = vpop.eup %1859 }
 0x2a1   :  { %v367_v23 = vsel %vm110_vm1, %v1860_v22, 0.0 }
 0x2a2   :  { %368 = vadd.xlane.f32.xlu0 %v367_v23 }
 0x2af   :  { %542 = vrot.lane.b32.xlu2 %v2073_v42, %s1986_s9 }
 0x2b3   :  { %521 = vrot.lane.b32.xlu1 %v2075_v43, %s1986_s9 }
 0x2b6   :  { %479 = vrot.lane.b32.xlu0 %v2077_v44, %s1986_s9 }
 0x2be   :  { %599 = vrot.lane.b32.xlu0 %v2031_v0, %s1987_s10 }
 0x2fd   :  { %v357_v24 = vpop.xlane.xlu0 %356 }
 0x2fe   :  { %1861 = vrcp.f32 %v357_v24 }
 0x304   :  { %v1862_v25 = vpop.eup %1861 }
 0x305   :  { %v381_v26 = vmul.f32 %v1862_v25, %v1846_v51  ;;  %v360_v27 = vpop.xlane.xlu1 %359 }
 0x307   :  { %v389_v28 = vpack.c.bf16 %v381_v26, %v381_v26 }
 0x309   :  { %1682 = vmatmul.msk.bf16.vlgmr.msrb.gmra.mxu0 %vm110_vm1, %v389_v28 }
 0x30a   :  { %v366_v29 = vpop.xlane.xlu2 %365 }
 0x30d   :  { %v354_v30 = vpop.xlane.xlu1 %353  ;;  %v363_v31 = vpop.xlane.xlu0 %362 }
 0x30e   :  { %1863 = vrcp.f32 %v354_v30  ;;  %v2138_v33 = vpop.f32.mrf.mxu1  ;;  %v596_v30 = vperm.slane %v2050_v5, 1 }
 0x30f   :  { %1865 = vrcp.f32 %v363_v31 }
 0x312   :  { %v543_v42 = vpop.permute.xlu2 %542 }
 0x313   :  { %v548_v43 = vsel %vm399_vm2, %v543_v42, 0 }
 0x314   :  { %v1864_v34 = vpop.eup %1863  ;;  %557 = vmatpush.bf16.msra.mxu0 %v548_v43 }
 0x315   :  { %v1866_v44 = vpop.eup %1865  ;;  %v380_v35 = vmul.f32 %v1864_v34, %v1854_v10  ;;  %v369_v36 = vpop.xlane.xlu0 %368 }
 0x316   :  { %v383_v37 = vmul.f32 %v1866_v44, %v1856_v13  ;;  %1867 = vrcp.f32 %v369_v36  ;;  %v414_v38 = vpop.f32.mrf.mxu1 }
 0x317   :  { %v388_v39 = vpack.c.bf16 %v380_v35, %v380_v35  ;;  %1869 = vrcp.f32 %v366_v29 }
 0x318   :  { %v391_v40 = vpack.c.bf16 %v383_v37, %v383_v37  ;;  %1871 = vrcp.f32 %v360_v27  ;;  %v1990_v37 = vmov 32.0  }
 0x319   :  { %1681 = vmatmul.msk.bf16.vlgmr.msra.gmra.mxu3 %vm110_vm1, %v388_v39  ;;  %1873 = vrcp.f32 %v1990_v37 }
 0x31a   :  { %1684 = vmatmul.msk.bf16.vlgmr.msrb.gmra.mxu2 %vm110_vm1, %v391_v40 }
 0x31c   :  { %v1868_v41 = vpop.eup %1867 }
 0x31d   :  { %v385_v45 = vmul.f32 %v1868_v41, %v1860_v22  ;;  %v1870_v47 = vpop.eup %1869 }
 0x31e   :  { %v1872_v49 = vpop.eup %1871  ;;  %v384_v50 = vmul.f32 %v1870_v47, %v1852_v8 }
 0x31f   :  { %v393_v46 = vpack.c.bf16 %v385_v45, %v385_v45  ;;  %v382_v53 = vmul.f32 %v1872_v49, %v2120_v63  ;;  %v1874_v38 = vpop.eup %1873 }
 0x320   :  { %v392_v54 = vpack.c.bf16 %v384_v50, %v384_v50  ;;  %v629_v39 = vmul.f32 32.0, %v1874_v38  ;;  %vm633_vm5 = vweird.f32 %v1874_v38 }
 0x321   :  { %1686 = vmatmul.msk.bf16.vlgmr.msra.gmra.mxu0 %vm110_vm1, %v393_v46  ;;  %v433_v48 = vpop.f32.mrf.mxu2  ;;  %v390_v32 = vpack.c.bf16 %v382_v53, %v382_v53 }
 0x322   :  { %v630_v40 = vsub.f32 1.0, %v629_v39 }
 0x324   :  { %v631_v41 = vmul.f32 %v1874_v38, %v630_v40 }
 0x325   :  { %v522_v51 = vpop.permute.xlu1 %521 }
 0x326   :  { %v527_v52 = vsel %vm399_vm2, %v522_v51, 0  ;;  %v632_v45 = vadd.f32 %v1874_v38, %v631_v41 }
 0x327   :  { %536 = vmatpush.bf16.msrb.mxu3 %v527_v52 }
 0x328   :  { %v480_v55 = vpop.permute.xlu0 %479  ;;  %v2169_v46 = vsel %vm633_vm5, %v1874_v38, %v632_v45 }
 0x329   :  { %v485_v56 = vsel %vm399_vm2, %v480_v55, 0  ;;  %v435_v57 = vpop.f32.mrf.mxu2  ;;  %v1785_v55 = vld [vmem:[%s2434_s2 + $0x8] sm:$0xff] }
 0x32a   :  { %494 = vmatpush.bf16.msrb.mxu1 %v485_v56  ;;  %1685 = vmatmul.msk.bf16.vlgmr.msrb.gmra.mxu3 %vm110_vm1, %v392_v54 }
 0x32b   :  { %706 = vmatpush.bf16.msra.mxu2 %v1785_v55  ;;  %v2210_v55 = vld [vmem:[%s2433_s1 + $0x18] sm:$0xff] }
 0x32c   :  { %849 = vmatpush.bf16.msrb.mxu0 %v2210_v55 }
 0x32d   :  { %1683 = vmatmul.msk.bf16.vlgmr.msrb.gmra.mxu1 %vm110_vm1, %v390_v32 }
 0x330   :  { %v600_v13 = vpop.permute.xlu0 %599 }
 0x331   :  { %612 = vmatpush.bf16.msra.mxu1 %v600_v13 }
 0x386   :  { %v475_v58 = vpop.f32.mrf.mxu0 }
 0x38e   :  { %v477_v59 = vpop.f32.mrf.mxu0 }
 0x39c   :  { %v454_v60 = vpop.f32.mrf.mxu3 }
 0x39d   :  { %v1811_v61 = vpack.i.bf16 %v475_v58, %v454_v60  ;;  %v517_v62 = vpop.f32.mrf.mxu2  ;;  %v1784_v58 = vld [vmem:[%s2434_s2] sm:$0xff] }
 0x39e   :  { %v559_v63 = vpop.f32.mrf.mxu0  ;;  %707 = vmatpush.bf16.msra.mxu2 %v1784_v58  ;;  %v2217_v58 = vld [vmem:[%s2433_s1 + $0x10] sm:$0xff] }
 0x39f   :  { %1812 = vrot.lane.b32.xlu1 %v1811_v61, %s1981_s24  ;;  %850 = vmatpush.bf16.msrb.mxu0 %v2217_v58 }
 0x3a4   :  { %v456_v0 = vpop.f32.mrf.mxu3 }
 0x3a5   :  { %v519_v4 = vpop.f32.mrf.mxu2 }
 0x3a6   :  { %v561_v6 = vpop.f32.mrf.mxu0 }
 0x3a7   :  { %597 = vrot.lane.b32.xlu1 %v2037_v1, %s1987_s10 }
 0x3aa   :  { %v496_v7 = vpop.f32.mrf.mxu1 }
 0x3ab   :  { %v1816_v8 = vpack.i.bf16 %v517_v62, %v496_v7 }
 0x3ad   :  { %1817 = vrot.lane.b32.xlu2 %v1816_v8, %s1988_s11  ;;  %v538_v9 = vpop.f32.mrf.mxu3 }
 0x3ae   :  { %v1821_v10 = vpack.i.bf16 %v559_v63, %v538_v9 }
 0x3b0   :  { %1822 = vrot.lane.b32.xlu0 %v1821_v10, %s1989_s12 }
 0x3b2   :  { %v498_v11 = vpop.f32.mrf.mxu1 }
 0x3b5   :  { %v540_v12 = vpop.f32.mrf.mxu3 }
 0x407   :  { %v1818_v1 = vpop.permute.xlu2 %1817 }
 0x408   :  { %v1820_v20 = vunpack.i.h.bf16 %v1818_v1  ;;  %v1819_v21 = vunpack.i.l.bf16 %v1818_v1  ;;  %v676_v1 = vperm.slane %v2050_v5, 3 }
 0x411   :  { %v1813_v14 = vpop.permute.xlu1 %1812 }
 0x412   :  { %v1815_v16 = vunpack.i.h.bf16 %v1813_v14  ;;  %v1814_v17 = vunpack.i.l.bf16 %v1813_v14  ;;  %v673_v14 = vperm.slane %v2050_v5, 2 }
 0x414   :  { %v588_v18 = vsel %vm110_vm1, %v433_v48, %v1815_v16  ;;  %v587_v19 = vsel %vm110_vm1, %v2138_v33, %v1814_v17 }
 0x415   :  { %v590_v25 = vsel %vm589_vm3, %v587_v19, %v1819_v21  ;;  %v591_v26 = vsel %vm589_vm3, %v588_v18, %v1820_v20 }
 0x419   :  { %v598_v15 = vpop.permute.xlu1 %597 }
 0x41a   :  { %613 = vmatpush.bf16.msra.mxu1 %v598_v15 }
 0x422   :  { %v1823_v22 = vpop.permute.xlu0 %1822 }
 0x423   :  { %v1825_v23 = vunpack.i.h.bf16 %v1823_v22  ;;  %v1824_v24 = vunpack.i.l.bf16 %v1823_v22 }
 0x425   :  { %v593_v27 = vsel %vm592_vm4, %v590_v25, %v1824_v24  ;;  %v594_v28 = vsel %vm592_vm4, %v591_v26, %v1825_v23  ;;  %v1789_v24 = vld [vmem:[%s2435_s3 + $0x18] sm:$0xff]  ;;  %v1788_v25 = vld [vmem:[%s2435_s3 + $0x10] sm:$0xff]  ;;  %v1787_v26 = vld [vmem:[%s2435_s3 + $0x8] sm:$0xff] }
 0x426   :  { %v595_v29 = vpack.c.bf16 %v594_v28, %v593_v27  ;;  %758 = vmatpush.bf16.msra.mxu3 %v1789_v24  ;;  %v1786_v27 = vld [vmem:[%s2435_s3] sm:$0xff]  ;;  %v2233_v24 = vld [vmem:[%s2436_s4 + $0x8] sm:$0xff] }
 0x428   :  { %1687 = vmatmul.msk.bf16.vlgmr.msra.gmra.mxu1 %vm59_vm0, %v595_v29  ;;  %v684_v29 = vperm.slane %v2050_v5, 6 }
 0x42a   :  { %759 = vmatpush.bf16.msra.mxu3 %v1788_v25  ;;  %v827_v25 = vperm.slane %v2233_v24, 0 }
 0x42e   :  { %760 = vmatpush.bf16.msra.mxu3 %v1787_v26 }
 0x432   :  { %761 = vmatpush.bf16.msra.mxu3 %v1786_v27 }
 0x4a5   :  { %v615_v31 = vpop.f32.mrf.mxu1 }
 0x4a6   :  { %v616_v33 = vadd.f32 %v615_v31, %v596_v30 }
 0x4a8   :  { %v620_v42 = vadd.f32 %v616_v33, %v2039_v2 }
 0x4aa   :  { %v622_v43 = vsel %vm59_vm0, %v620_v42, 0.0 }
 0x4ab   :  { %623 = vadd.xlane.f32.xlu2 %v622_v43 }
 0x4ad   :  { %v617_v34 = vpop.f32.mrf.mxu1 }
 0x4ae   :  { %v618_v44 = vadd.f32 %v617_v34, %v596_v30 }
 0x4b0   :  { %v621_v35 = vadd.f32 %v618_v44, %v2041_v3  ;;  %v725_v44 = vperm.slane %v2050_v5, 7 }
 0x4b2   :  { %v625_v36 = vsel %vm59_vm0, %v621_v35, 0.0 }
 0x4b3   :  { %626 = vadd.xlane.f32.xlu0 %v625_v36 }
 0x51e   :  { %v624_v2 = vpop.xlane.xlu2 %623 }
 0x51f   :  { %v635_v47 = vmul.f32 %v2169_v46, %v624_v2 }
 0x521   :  { %v637_v48 = vsub.f32 %v620_v42, %v635_v47 }
 0x523   :  { %v639_v49 = vmul.f32 %v637_v48, %v637_v48 }
 0x525   :  { %v641_v3 = vsel %vm59_vm0, %v639_v49, 0.0 }
 0x526   :  { %v627_v50 = vpop.xlane.xlu0 %626  ;;  %642 = vadd.xlane.f32.xlu1 %v641_v3 }
 0x527   :  { %v636_v51 = vmul.f32 %v2169_v46, %v627_v50 }
 0x529   :  { %v638_v52 = vsub.f32 %v621_v35, %v636_v51 }
 0x52b   :  { %v640_v53 = vmul.f32 %v638_v52, %v638_v52 }
 0x52d   :  { %v644_v54 = vsel %vm59_vm0, %v640_v53, 0.0 }
 0x52e   :  { %645 = vadd.xlane.f32.xlu2 %v644_v54 }
 0x599   :  { %v643_v56 = vpop.xlane.xlu1 %642 }
 0x59a   :  { %v647_v57 = vmul.f32 %v643_v56, %v2169_v46 }
 0x59c   :  { %v649_v32 = vadd.f32 1e-05, %v647_v57 }
 0x59e   :  { %1875 = vrsqrt.f32 %v649_v32  ;;  %vm657_vm7 = vweird.f32 %v649_v32 }
 0x5a1   :  { %v646_v59 = vpop.xlane.xlu2 %645 }
 0x5a2   :  { %v648_v60 = vmul.f32 %v646_v59, %v2169_v46 }
 0x5a4   :  { %v1876_v61 = vpop.eup %1875  ;;  %v650_v62 = vadd.f32 1e-05, %v648_v60 }
 0x5a5   :  { %v652_v63 = vmul.f32 %v1876_v61, %v649_v32  ;;  %vm658_vm6 = vweird.f32 %v1876_v61 }
 0x5a6   :  { %1877 = vrsqrt.f32 %v650_v62  ;;  %vm659_vm8 = vmor %vm657_vm7, %vm658_vm6  ;;  %vm667_vm10 = vweird.f32 %v650_v62 }
 0x5a7   :  { %v653_v0 = vmul.f32 %v1876_v61, %v652_v63 }
 0x5a9   :  { %v654_v4 = vmul.f32 0.5, %v653_v0 }
 0x5ab   :  { %v655_v6 = vsub.f32 1.5, %v654_v4 }
 0x5ac   :  { %v1878_v7 = vpop.eup %1877 }
 0x5ad   :  { %v656_v8 = vmul.f32 %v1876_v61, %v655_v6  ;;  %v662_v9 = vmul.f32 %v1878_v7, %v650_v62  ;;  %vm668_vm9 = vweird.f32 %v1878_v7 }
 0x5ae   :  { %vm669_vm11 = vmor %vm667_vm10, %vm668_vm9 }
 0x5af   :  { %v663_v10 = vmul.f32 %v1878_v7, %v662_v9  ;;  %v660_v11 = vsel %vm659_vm8, %v1876_v61, %v656_v8 }
 0x5b0   :  { %v671_v15 = vmul.f32 %v660_v11, %v637_v48 }
 0x5b1   :  { %v664_v12 = vmul.f32 0.5, %v663_v10 }
 0x5b2   :  { %v674_v18 = vmul.f32 %v673_v14, %v671_v15 }
 0x5b3   :  { %v665_v13 = vsub.f32 1.5, %v664_v12 }
 0x5b4   :  { %v677_v21 = vadd.f32 %v676_v1, %v674_v18 }
 0x5b5   :  { %v666_v16 = vmul.f32 %v1878_v7, %v665_v13 }
 0x5b7   :  { %v670_v17 = vsel %vm669_vm11, %v1878_v7, %v666_v16 }
 0x5b8   :  { %v672_v19 = vmul.f32 %v670_v17, %v638_v52 }
 0x5ba   :  { %v675_v20 = vmul.f32 %v673_v14, %v672_v19  ;;  %v814_v14 = vperm.slane %v2050_v5, 4 }
 0x5bc   :  { %v678_v22 = vadd.f32 %v676_v1, %v675_v20  ;;  %v817_v1 = vperm.slane %v2050_v5, 5 }
 0x5be   :  { %v679_v23 = vpack.c.bf16 %v678_v22, %v677_v21 }
 0x5c0   :  { %1696 = vmatmul.msk.bf16.vlgmr.msra.gmra.mxu2 %vm59_vm0, %v679_v23 }
 0x643   :  { %v709_v28 = vpop.f32.mrf.mxu2 }
 0x644   :  { %v710_v30 = vadd.f32 %v709_v28, %v684_v29 }
 0x646   :  { %v714_v42 = vmax.f32 %v710_v30, 0.0 }
 0x64b   :  { %v711_v31 = vpop.f32.mrf.mxu2 }
 0x64c   :  { %v712_v33 = vadd.f32 %v711_v31, %v684_v29 }
 0x64e   :  { %v715_v43 = vmax.f32 %v712_v33, 0.0 }
 0x650   :  { %v716_v34 = vpack.c.bf16 %v715_v43, %v714_v42 }
 0x652   :  { %1713 = vmatmul.msk.bf16.vlgmr.msra.gmra.mxu3 %vm750_vm12, %v716_v34 }
 0x6d5   :  { %v763_v35 = vpop.f32.mrf.mxu3 }
 0x6d6   :  { %v764_v36 = vadd.f32 %v763_v35, %v725_v44 }
 0x6d8   :  { %v768_v37 = vadd.f32 %v764_v36, %v677_v21 }
 0x6da   :  { %v770_v38 = vsel %vm59_vm0, %v768_v37, 0.0 }
 0x6db   :  { %771 = vadd.xlane.f32.xlu0 %v770_v38 }
 0x6dd   :  { %v765_v39 = vpop.f32.mrf.mxu3 }
 0x6de   :  { %v766_v40 = vadd.f32 %v765_v39, %v725_v44 }
 0x6e0   :  { %v769_v41 = vadd.f32 %v766_v40, %v678_v22 }
 0x6e2   :  { %v773_v45 = vsel %vm59_vm0, %v769_v41, 0.0 }
 0x6e3   :  { %774 = vadd.xlane.f32.xlu1 %v773_v45 }
 0x74e   :  { %v772_v2 = vpop.xlane.xlu0 %771 }
 0x74f   :  { %v776_v47 = vmul.f32 %v772_v2, %v2169_v46 }
 0x751   :  { %v778_v48 = vsub.f32 %v768_v37, %v776_v47 }
 0x753   :  { %v780_v49 = vmul.f32 %v778_v48, %v778_v48 }
 0x755   :  { %v782_v3 = vsel %vm59_vm0, %v780_v49, 0.0 }
 0x756   :  { %v775_v50 = vpop.xlane.xlu1 %774  ;;  %783 = vadd.xlane.f32.xlu2 %v782_v3 }
 0x757   :  { %v777_v51 = vmul.f32 %v775_v50, %v2169_v46 }
 0x759   :  { %v779_v52 = vsub.f32 %v769_v41, %v777_v51 }
 0x75b   :  { %v781_v53 = vmul.f32 %v779_v52, %v779_v52 }
 0x75d   :  { %v785_v54 = vsel %vm59_vm0, %v781_v53, 0.0 }
 0x75e   :  { %786 = vadd.xlane.f32.xlu0 %v785_v54 }
 0x7c9   :  { %v784_v56 = vpop.xlane.xlu2 %783 }
 0x7ca   :  { %v788_v57 = vmul.f32 %v784_v56, %v2169_v46 }
 0x7cc   :  { %v790_v32 = vadd.f32 1e-05, %v788_v57 }
 0x7ce   :  { %1879 = vrsqrt.f32 %v790_v32  ;;  %vm798_vm14 = vweird.f32 %v790_v32 }
 0x7d1   :  { %v787_v59 = vpop.xlane.xlu0 %786 }
 0x7d2   :  { %v789_v60 = vmul.f32 %v787_v59, %v2169_v46 }
 0x7d4   :  { %v1880_v61 = vpop.eup %1879  ;;  %v791_v62 = vadd.f32 1e-05, %v789_v60 }
 0x7d5   :  { %v793_v63 = vmul.f32 %v1880_v61, %v790_v32  ;;  %vm799_vm13 = vweird.f32 %v1880_v61 }
 0x7d6   :  { %1881 = vrsqrt.f32 %v791_v62  ;;  %vm800_vm15 = vmor %vm798_vm14, %vm799_vm13  ;;  %vm808_vm6 = vweird.f32 %v791_v62 }
 0x7d7   :  { %v794_v0 = vmul.f32 %v1880_v61, %v793_v63 }
 0x7d9   :  { %v795_v4 = vmul.f32 0.5, %v794_v0 }
 0x7db   :  { %v796_v6 = vsub.f32 1.5, %v795_v4 }
 0x7dc   :  { %v1882_v7 = vpop.eup %1881 }
 0x7dd   :  { %v797_v8 = vmul.f32 %v1880_v61, %v796_v6  ;;  %v803_v9 = vmul.f32 %v1882_v7, %v791_v62  ;;  %vm809_vm5 = vweird.f32 %v1882_v7 }
 0x7de   :  { %vm810_vm7 = vmor %vm808_vm6, %vm809_vm5 }
 0x7df   :  { %v804_v10 = vmul.f32 %v1882_v7, %v803_v9  ;;  %v801_v11 = vsel %vm800_vm15, %v1880_v61, %v797_v8 }
 0x7e0   :  { %v812_v15 = vmul.f32 %v801_v11, %v778_v48 }
 0x7e1   :  { %v805_v12 = vmul.f32 0.5, %v804_v10 }
 0x7e2   :  { %v815_v18 = vmul.f32 %v814_v14, %v812_v15 }
 0x7e3   :  { %v806_v13 = vsub.f32 1.5, %v805_v12 }
 0x7e4   :  { %v2223_v21 = vadd.f32 %v817_v1, %v815_v18 }
 0x7e5   :  { %v807_v16 = vmul.f32 %v1882_v7, %v806_v13 }
 0x7e7   :  { %v811_v17 = vsel %vm810_vm7, %v1882_v7, %v807_v16 }
 0x7e8   :  { %v813_v19 = vmul.f32 %v811_v17, %v779_v52 }
 0x7ea   :  { %v816_v20 = vmul.f32 %v814_v14, %v813_v19 }
 0x7ec   :  { %v2225_v22 = vadd.f32 %v817_v1, %v816_v20 }
 0x7ee   :  { %v826_v23 = vpack.c.bf16 %v2225_v22, %v2223_v21 }
 0x7f0   :  { %1726 = vmatmul.msk.bf16.vlgmr.msrb.gmra.mxu0 %vm59_vm0, %v826_v23 }
 0x86d   :  { %v852_v5 = vpop.f32.mrf.mxu0 }
 0x86e   :  { %v853_v26 = vadd.f32 %v852_v5, %v827_v25 }
 0x870   :  { %859 = vrot.lane.b32.xlu1 %v853_v26, %s1983_s6  ;;  %v877_v31 = vpack.c.bf16 %v853_v26, %v853_v26 }
 0x872   :  { %v886_v42 = vunpack.c.l.b16 %v877_v31 }
 0x874   :  { %v2243_v43 = vpack.c.b16 %v886_v42, %v886_v42 }
 0x875   :  { %v854_v27 = vpop.f32.mrf.mxu0 }
 0x876   :  { %v855_v28 = vadd.f32 %v854_v27, %v827_v25 }
 0x878   :  { %867 = vrot.lane.b32.xlu0 %v855_v28, %s1982_s30  ;;  %861 = vrot.lane.b32.xlu2 %v855_v28, %s1983_s6  ;;  %v878_v29 = vpack.c.bf16 %v855_v28, %v855_v28 }
 0x879   :  { %871 = vrot.lane.b32.xlu1 %v853_v26, %s1984_s7 }
 0x87a   :  { %v910_v30 = vunpack.c.l.b16 %v878_v29 }
 0x87c   :  { %v911_v33 = vpack.c.b16 %v910_v30, %v910_v30 }
 0x880   :  { %873 = vrot.lane.b32.xlu2 %v855_v28, %s1984_s7  ;;  %865 = vrot.lane.b32.xlu0 %v853_v26, %s1982_s30 }
 0x881   :  { %912 = vrot.lane.b32.xlu1 %v911_v33, %s1985_s8 }
 0x888   :  { %888 = vrot.lane.b32.xlu2 %v2243_v43, %s1985_s8 }
 0x8d2   :  { %v862_v34 = vpop.permute.xlu2 %861 }
 0x8d3   :  { %v880_v44 = vpack.c.bf16 %v862_v34, %v862_v34 }
 0x8d5   :  { %v958_v35 = vunpack.c.l.b16 %v880_v44 }
 0x8d7   :  { %v2247_v36 = vpack.c.b16 %v958_v35, %v958_v35 }
 0x8d9   :  { %960 = vrot.lane.b32.xlu1 %v2247_v36, %s1985_s8 }
 0x8da   :  { %v874_v37 = vpop.permute.xlu2 %873 }
 0x8db   :  { %v884_v52 = vpack.c.bf16 %v874_v37, %v874_v37 }
 0x8dd   :  { %v1054_v57 = vunpack.c.l.b16 %v884_v52 }
 0x8df   :  { %v2266_v62 = vpack.c.b16 %v1054_v57, %v1054_v57 }
 0x8e2   :  { %v860_v38 = vpop.permute.xlu1 %859  ;;  %v889_v39 = vpop.permute.xlu2 %888 }
 0x8e3   :  { %v879_v40 = vpack.c.bf16 %v860_v38, %v860_v38  ;;  %v894_v41 = vsel %vm110_vm1, %v889_v39, 0 }
 0x8e4   :  { %903 = vmatpush.bf16.xpose.msrb.mxu1 %v894_v41 }
 0x8e5   :  { %v934_v45 = vunpack.c.l.b16 %v879_v40 }
 0x8e7   :  { %v2252_v2 = vpack.c.b16 %v934_v45, %v934_v45 }
 0x8e9   :  { %936 = vrot.lane.b32.xlu0 %v2252_v2, %s1985_s8 }
 0x8ea   :  { %v868_v47 = vpop.permute.xlu0 %867 }
 0x8eb   :  { %v882_v48 = vpack.c.bf16 %v868_v47, %v868_v47  ;;  %v872_v49 = vpop.permute.xlu1 %871  ;;  %1727 = vmatmul.msk.bf16.vlgmr.msrb.gmra.mxu1 %vm110_vm1, %v877_v31 }
 0x8ec   :  { %v883_v3 = vpack.c.bf16 %v872_v49, %v872_v49 }
 0x8ed   :  { %v1006_v50 = vunpack.c.l.b16 %v882_v48 }
 0x8ee   :  { %v1030_v51 = vunpack.c.l.b16 %v883_v3 }
 0x8ef   :  { %v2257_v53 = vpack.c.b16 %v1006_v50, %v1006_v50 }
 0x8f0   :  { %v2259_v54 = vpack.c.b16 %v1030_v51, %v1030_v51 }
 0x8f1   :  { %1008 = vrot.lane.b32.xlu0 %v2257_v53, %s1985_s8 }
 0x8f2   :  { %1032 = vrot.lane.b32.xlu2 %v2259_v54, %s1985_s8  ;;  %v866_v56 = vpop.permute.xlu0 %865 }
 0x8f3   :  { %v881_v32 = vpack.c.bf16 %v866_v56, %v866_v56  ;;  %v913_v59 = vpop.permute.xlu1 %912 }
 0x8f4   :  { %v918_v60 = vsel %vm110_vm1, %v913_v59, 0 }
 0x8f5   :  { %v982_v61 = vunpack.c.l.b16 %v881_v32  ;;  %927 = vmatpush.bf16.xpose.msrb.mxu2 %v918_v60 }
 0x8f7   :  { %v2268_v63 = vpack.c.b16 %v982_v61, %v982_v61 }
 0x8f9   :  { %984 = vrot.lane.b32.xlu1 %v2268_v63, %s1985_s8  ;;  %1056 = vrot.lane.b32.xlu0 %v2266_v62, %s1985_s8 }
 0x8fa   :  { %1194 = vrot.lane.b32.xlu2 %v911_v33, %s1986_s9 }
 0x8fc   :  { %1728 = vmatmul.msk.bf16.vlgmr.msrb.gmra.mxu2 %vm110_vm1, %v878_v29 }
 0x94b   :  { %v961_v0 = vpop.permute.xlu1 %960 }
 0x94c   :  { %v966_v4 = vsel %vm110_vm1, %v961_v0, 0  ;;  %v1033_v6 = vpop.permute.xlu2 %1032 }
 0x94d   :  { %975 = vmatpush.bf16.xpose.msra.mxu0 %v966_v4  ;;  %v1038_v9 = vsel %vm110_vm1, %v1033_v6, 0 }
 0x954   :  { %1730 = vmatmul.msk.bf16.vlgmr.msra.gmra.mxu0 %vm110_vm1, %v880_v44  ;;  %v1195_v10 = vpop.permute.xlu2 %1194 }
 0x955   :  { %v1200_v13 = vsel %vm399_vm2, %v1195_v10, 0 }
 0x95b   :  { %v937_v7 = vpop.permute.xlu0 %936 }
 0x95c   :  { %v942_v8 = vsel %vm110_vm1, %v937_v7, 0 }
 0x95d   :  { %951 = vmatpush.bf16.xpose.msrb.mxu3 %v942_v8 }
 0x963   :  { %v1009_v11 = vpop.permute.xlu0 %1008 }
 0x964   :  { %v1014_v12 = vsel %vm110_vm1, %v1009_v11, 0  ;;  %1729 = vmatmul.msk.bf16.vlgmr.msrb.gmra.mxu3 %vm110_vm1, %v879_v40 }
 0x965   :  { %1047 = vmatpush.bf16.xpose.msra.mxu3 %v1038_v9  ;;  %1023 = vmatpush.bf16.xpose.msra.mxu2 %v1014_v12 }
 0x968   :  { %v905_v14 = vpop.f32.mrf.mxu1 }
 0x969   :  { %v1077_v15 = vsel %vm110_vm1, %v905_v14, -inf }
 0x96a   :  { %1078 = vmax.xlane.f32.xlu0 %v1077_v15 }
 0x96b   :  { %v1057_v16 = vpop.permute.xlu0 %1056  ;;  %v985_v17 = vpop.permute.xlu1 %984 }
 0x96c   :  { %v1062_v1 = vsel %vm110_vm1, %v1057_v16, 0  ;;  %v990_v18 = vsel %vm110_vm1, %v985_v17, 0  ;;  %1732 = vmatmul.msk.bf16.vlgmr.msra.gmra.mxu2 %vm110_vm1, %v882_v48 }
 0x96d   :  { %1209 = vmatpush.bf16.msrb.mxu2 %v1200_v13  ;;  %999 = vmatpush.bf16.xpose.msra.mxu1 %v990_v18 }
 0x96e   :  { %1071 = vmatpush.bf16.xpose.msrb.mxu0 %v1062_v1 }
 0x970   :  { %v907_v19 = vpop.f32.mrf.mxu1 }
 0x974   :  { %1731 = vmatmul.msk.bf16.vlgmr.msra.gmra.mxu1 %vm110_vm1, %v881_v32  ;;  %1733 = vmatmul.msk.bf16.vlgmr.msra.gmra.mxu3 %vm110_vm1, %v883_v3 }
 0x975   :  { %1734 = vmatmul.msk.bf16.vlgmr.msrb.gmra.mxu0 %vm110_vm1, %v884_v52 }
 0x97f   :  { %v929_v20 = vpop.f32.mrf.mxu2 }
 0x980   :  { %v1080_v23 = vsel %vm110_vm1, %v929_v20, -inf }
 0x981   :  { %1081 = vmax.xlane.f32.xlu2 %v1080_v23 }
 0x987   :  { %v931_v25 = vpop.f32.mrf.mxu2 }
 0x9d1   :  { %v977_v5 = vpop.f32.mrf.mxu0 }
 0x9d2   :  { %v1086_v49 = vsel %vm110_vm1, %v977_v5, -inf }
 0x9d9   :  { %v979_v26 = vpop.f32.mrf.mxu0 }
 0x9dd   :  { %v1079_v27 = vpop.xlane.xlu0 %1078 }
 0x9de   :  { %v1101_v28 = vsub.f32 %v905_v14, %v1079_v27 }
 0x9e0   :  { %v1109_v29 = vmul.f32 1.442695, %v1101_v28 }
 0x9e2   :  { %1883 = vpow2.f32 %v1109_v29 }
 0x9e7   :  { %v953_v30 = vpop.f32.mrf.mxu3 }
 0x9e8   :  { %v1083_v31 = vsel %vm110_vm1, %v953_v30, -inf  ;;  %v2292_v33 = vpop.eup %1883 }
 0x9e9   :  { %1084 = vmax.xlane.f32.xlu1 %v1083_v31  ;;  %v1125_v44 = vsel %vm110_vm1, %v2292_v33, 0.0 }
 0x9ef   :  { %v955_v42 = vpop.f32.mrf.mxu3  ;;  %v1025_v34 = vpop.f32.mrf.mxu2 }
 0x9f0   :  { %v1092_v41 = vsel %vm110_vm1, %v1025_v34, -inf }
 0x9f1   :  { %1126 = vadd.xlane.f32.xlu1 %v1125_v44  ;;  %v1001_v35 = vpop.f32.mrf.mxu1 }
 0x9f2   :  { %v2296_v37 = vpop.f32.mrf.mxu0  ;;  %v1089_v38 = vsel %vm110_vm1, %v1001_v35, -inf }
 0x9f3   :  { %1090 = vmax.xlane.f32.xlu2 %v1089_v38  ;;  %v1098_v50 = vsel %vm110_vm1, %v2296_v37, -inf }
 0x9f4   :  { %v1082_v51 = vpop.xlane.xlu2 %1081 }
 0x9f5   :  { %v1102_v52 = vsub.f32 %v929_v20, %v1082_v51 }
 0x9f7   :  { %v1027_v39 = vpop.f32.mrf.mxu2  ;;  %v1049_v40 = vpop.f32.mrf.mxu3  ;;  %v1111_v56 = vmul.f32 1.442695, %v1102_v52 }
 0x9f8   :  { %v1095_v45 = vsel %vm110_vm1, %v1049_v40, -inf }
 0x9f9   :  { %1093 = vmax.xlane.f32.xlu1 %v1092_v41  ;;  %v1003_v47 = vpop.f32.mrf.mxu1  ;;  %1096 = vmax.xlane.f32.xlu0 %v1095_v45  ;;  %1885 = vpow2.f32 %v1111_v56 }
 0x9fa   :  { %v1075_v48 = vpop.f32.mrf.mxu0 }
 0x9fb   :  { %1087 = vmax.xlane.f32.xlu2 %v1086_v49 }
 0x9ff   :  { %v1051_v3 = vpop.f32.mrf.mxu3  ;;  %v2312_v57 = vpop.eup %1885 }
 0xa00   :  { %v1128_v32 = vsel %vm110_vm1, %v2312_v57, 0.0 }
 0xa01   :  { %1099 = vmax.xlane.f32.xlu1 %v1098_v50 }
 0xa0d   :  { %1173 = vrot.lane.b32.xlu0 %v2243_v43, %s1986_s9 }
 0xa13   :  { %1236 = vrot.lane.b32.xlu2 %v2247_v36, %s1986_s9 }
 0xa1a   :  { %1215 = vrot.lane.b32.xlu1 %v2252_v2, %s1986_s9 }
 0xa1b   :  { %1278 = vrot.lane.b32.xlu2 %v2257_v53, %s1986_s9 }
 0xa37   :  { %1129 = vadd.xlane.f32.xlu0 %v1128_v32 }
 0xa5c   :  { %v1085_v43 = vpop.xlane.xlu1 %1084 }
 0xa5d   :  { %v1103_v61 = vsub.f32 %v953_v30, %v1085_v43 }
 0xa5f   :  { %v1113_v53 = vmul.f32 1.442695, %v1103_v61 }
 0xa64   :  { %v1127_v59 = vpop.xlane.xlu1 %1126 }
 0xa66   :  { %v1091_v60 = vpop.xlane.xlu2 %1090 }
 0xa67   :  { %v1105_v36 = vsub.f32 %v1001_v35, %v1091_v60 }
 0xa69   :  { %v1117_v0 = vmul.f32 1.442695, %v1105_v36 }
 0xa6b   :  { %1887 = vpow2.f32 %v1117_v0 }
 0xa6c   :  { %v1094_v2 = vpop.xlane.xlu1 %1093  ;;  %v1097_v4 = vpop.xlane.xlu0 %1096  ;;  %1889 = vpow2.f32 %v1113_v53 }
 0xa6d   :  { %v1107_v6 = vsub.f32 %v1049_v40, %v1097_v4  ;;  %v1106_v11 = vsub.f32 %v1025_v34, %v1094_v2 }
 0xa6e   :  { %v1088_v7 = vpop.xlane.xlu2 %1087 }
 0xa6f   :  { %v1121_v8 = vmul.f32 1.442695, %v1107_v6  ;;  %v1104_v9 = vsub.f32 %v977_v5, %v1088_v7  ;;  %v1119_v14 = vmul.f32 1.442695, %v1106_v11 }
 0xa71   :  { %v2316_v10 = vpop.eup %1887  ;;  %v1115_v12 = vmul.f32 1.442695, %v1104_v9  ;;  %1891 = vpow2.f32 %v1121_v8 }
 0xa72   :  { %v1137_v13 = vsel %vm110_vm1, %v2316_v10, 0.0  ;;  %v1890_v17 = vpop.eup %1889 }
 0xa73   :  { %1893 = vpow2.f32 %v1115_v12  ;;  %1138 = vadd.xlane.f32.xlu2 %v1137_v13  ;;  %v1131_v25 = vsel %vm110_vm1, %v1890_v17, 0.0 }
 0xa74   :  { %1895 = vrcp.f32 %v1127_v59  ;;  %v1100_v15 = vpop.xlane.xlu1 %1099 }
 0xa75   :  { %1897 = vpow2.f32 %v1119_v14  ;;  %v1108_v20 = vsub.f32 %v2296_v37, %v1100_v15 }
 0xa76   :  { %v1237_v16 = vpop.permute.xlu2 %1236 }
 0xa77   :  { %v1242_v1 = vsel %vm399_vm2, %v1237_v16, 0  ;;  %v2321_v18 = vpop.eup %1891  ;;  %v1123_v27 = vmul.f32 1.442695, %v1108_v20 }
 0xa78   :  { %1251 = vmatpush.bf16.msra.mxu0 %v1242_v1  ;;  %v1143_v23 = vsel %vm110_vm1, %v2321_v18, 0.0 }
 0xa79   :  { %v1894_v19 = vpop.eup %1893  ;;  %1144 = vadd.xlane.f32.xlu1 %v1143_v23  ;;  %1899 = vpow2.f32 %v1123_v27 }
 0xa7a   :  { %v1134_v5 = vsel %vm110_vm1, %v1894_v19, 0.0  ;;  %v1896_v26 = vpop.eup %1895 }
 0xa7b   :  { %1132 = vadd.xlane.f32.xlu2 %v1131_v25  ;;  %1135 = vadd.xlane.f32.xlu0 %v1134_v5  ;;  %v1157_v28 = vmul.f32 %v1896_v26, %v2292_v33  ;;  %v1898_v30 = vpop.eup %1897 }
 0xa7c   :  { %v1140_v35 = vsel %vm110_vm1, %v1898_v30, 0.0 }
 0xa7d   :  { %v1165_v44 = vpack.c.bf16 %v1157_v28, %v1157_v28 }
 0xa7e   :  { %v1279_v29 = vpop.permute.xlu2 %1278 }
 0xa7f   :  { %v1284_v31 = vsel %vm399_vm2, %v1279_v29, 0  ;;  %v1174_v42 = vpop.permute.xlu0 %1173  ;;  %v1900_v37 = vpop.eup %1899 }
 0xa80   :  { %v1179_v34 = vsel %vm399_vm2, %v1174_v42, 0  ;;  %1293 = vmatpush.bf16.msra.mxu2 %v1284_v31  ;;  %v1146_v38 = vsel %vm110_vm1, %v1900_v37, 0.0 }
 0xa81   :  { %1188 = vmatpush.bf16.msrb.mxu1 %v1179_v34 }
 0xa83   :  { %1141 = vadd.xlane.f32.xlu0 %v1140_v35 }
 0xa84   :  { %1735 = vmatmul.msk.bf16.vlgmr.msrb.gmra.mxu1 %vm110_vm1, %v1165_v44 }
 0xa8b   :  { %1147 = vadd.xlane.f32.xlu0 %v1146_v38 }
 0xa8c   :  { %v1216_v33 = vpop.permute.xlu1 %1215 }
 0xa8d   :  { %v1221_v39 = vsel %vm399_vm2, %v1216_v33, 0 }
 0xa8e   :  { %1230 = vmatpush.bf16.msrb.mxu3 %v1221_v39 }
 0xa92   :  { %1299 = vrot.lane.b32.xlu1 %v2259_v54, %s1986_s9 }
 0xa93   :  { %1320 = vrot.lane.b32.xlu2 %v2266_v62, %s1986_s9 }
 0xa9f   :  { %1257 = vrot.lane.b32.xlu0 %v2268_v63, %s1986_s9 }
 0xaa7   :  { %1375 = vrot.lane.b32.xlu0 %v2210_v55, %s1987_s10 }
 0xaaa   :  { %v1130_v40 = vpop.xlane.xlu0 %1129 }
 0xaab   :  { %1901 = vrcp.f32 %v1130_v40 }
 0xab1   :  { %v1902_v41 = vpop.eup %1901 }
 0xab2   :  { %v1158_v45 = vmul.f32 %v1902_v41, %v2312_v57 }
 0xab4   :  { %v1166_v47 = vpack.c.bf16 %v1158_v45, %v1158_v45 }
 0xab6   :  { %1736 = vmatmul.msk.bf16.vlgmr.msrb.gmra.mxu2 %vm110_vm1, %v1166_v47 }
 0xae6   :  { %v1139_v48 = vpop.xlane.xlu2 %1138 }
 0xaec   :  { %v1145_v57 = vpop.xlane.xlu1 %1144 }
 0xaee   :  { %v1136_v49 = vpop.xlane.xlu0 %1135  ;;  %v1133_v54 = vpop.xlane.xlu2 %1132 }
 0xaef   :  { %1903 = vrcp.f32 %v1136_v49 }
 0xaf0   :  { %1905 = vrcp.f32 %v1133_v54 }
 0xaf5   :  { %v1904_v62 = vpop.eup %1903 }
 0xaf6   :  { %v1906_v3 = vpop.eup %1905  ;;  %v1160_v50 = vmul.f32 %v1904_v62, %v1894_v19  ;;  %v1142_v63 = vpop.xlane.xlu0 %1141 }
 0xaf7   :  { %v1321_v51 = vpop.permute.xlu2 %1320  ;;  %v1159_v52 = vmul.f32 %v1906_v3, %v1890_v17  ;;  %1907 = vrcp.f32 %v1142_v63 }
 0xaf8   :  { %v1326_v55 = vsel %vm399_vm2, %v1321_v51, 0  ;;  %v1168_v56 = vpack.c.bf16 %v1160_v50, %v1160_v50  ;;  %1909 = vrcp.f32 %v1145_v57  ;;  %v1372_v51 = vperm.slane %v2233_v24, 1 }
 0xaf9   :  { %1335 = vmatpush.bf16.msrb.mxu0 %v1326_v55  ;;  %v1167_v32 = vpack.c.bf16 %v1159_v52, %v1159_v52 }
 0xafa   :  { %1738 = vmatmul.msk.bf16.vlgmr.msra.gmra.mxu0 %vm110_vm1, %v1168_v56 }
 0xafb   :  { %1737 = vmatmul.msk.bf16.vlgmr.msrb.gmra.mxu3 %vm110_vm1, %v1167_v32 }
 0xafd   :  { %v1908_v43 = vpop.eup %1907 }
 0xafe   :  { %v1162_v59 = vmul.f32 %v1908_v43, %v1898_v30  ;;  %v1148_v60 = vpop.xlane.xlu0 %1147  ;;  %v1910_v0 = vpop.eup %1909 }
 0xaff   :  { %1911 = vrcp.f32 %v1148_v60  ;;  %v1163_v4 = vmul.f32 %v1910_v0, %v2321_v18 }
 0xb00   :  { %v1170_v36 = vpack.c.bf16 %v1162_v59, %v1162_v59  ;;  %1913 = vrcp.f32 %v1139_v48 }
 0xb01   :  { %v1190_v61 = vpop.f32.mrf.mxu1  ;;  %v1171_v9 = vpack.c.bf16 %v1163_v4, %v1163_v4 }
 0xb02   :  { %1740 = vmatmul.msk.bf16.vlgmr.msra.gmra.mxu2 %vm110_vm1, %v1170_v36 }
 0xb04   :  { %v1300_v53 = vpop.permute.xlu1 %1299 }
 0xb05   :  { %v1912_v2 = vpop.eup %1911  ;;  %v1305_v7 = vsel %vm399_vm2, %v1300_v53, 0 }
 0xb06   :  { %v1164_v6 = vmul.f32 %v1912_v2, %v1900_v37  ;;  %1314 = vmatpush.bf16.msra.mxu3 %v1305_v7  ;;  %v1914_v12 = vpop.eup %1913 }
 0xb07   :  { %v1161_v13 = vmul.f32 %v1914_v12, %v2316_v10  ;;  %v1792_v12 = vld [vmem:[%s2434_s2 + $0x10] sm:$0xff] }
 0xb08   :  { %v1172_v8 = vpack.c.bf16 %v1164_v6, %v1164_v6 }
 0xb09   :  { %v1192_v11 = vpop.f32.mrf.mxu1  ;;  %v1169_v16 = vpack.c.bf16 %v1161_v13, %v1161_v13 }
 0xb0a   :  { %1742 = vmatmul.msk.bf16.vlgmr.msrb.gmra.mxu0 %vm110_vm1, %v1172_v8 }
 0xb0b   :  { %1741 = vmatmul.msk.bf16.vlgmr.msra.gmra.mxu3 %vm110_vm1, %v1171_v9 }
 0xb11   :  { %v1258_v14 = vpop.permute.xlu0 %1257 }
 0xb12   :  { %v1263_v15 = vsel %vm399_vm2, %v1258_v14, 0 }
 0xb13   :  { %1272 = vmatpush.bf16.msra.mxu1 %v1263_v15 }
 0xb16   :  { %1739 = vmatmul.msk.bf16.vlgmr.msra.gmra.mxu1 %vm110_vm1, %v1169_v16 }
 0xb19   :  { %v1376_v44 = vpop.permute.xlu0 %1375 }
 0xb1a   :  { %1388 = vmatpush.bf16.msrb.mxu1 %v1376_v44 }
 0xb39   :  { %v1211_v17 = vpop.f32.mrf.mxu2 }
 0xb41   :  { %v1213_v1 = vpop.f32.mrf.mxu2 }
 0xb77   :  { %v1253_v18 = vpop.f32.mrf.mxu0 }
 0xb7e   :  { %v1232_v19 = vpop.f32.mrf.mxu3 }
 0xb7f   :  { %v1826_v20 = vpack.i.bf16 %v1253_v18, %v1232_v19  ;;  %v1255_v23 = vpop.f32.mrf.mxu0 }
 0xb81   :  { %1827 = vrot.lane.b32.xlu1 %v1826_v20, %s1981_s24 }
 0xb85   :  { %v1295_v25 = vpop.f32.mrf.mxu2 }
 0xb86   :  { %v1234_v5 = vpop.f32.mrf.mxu3 }
 0xb87   :  { %v1337_v26 = vpop.f32.mrf.mxu0 }
 0xb89   :  { %1373 = vrot.lane.b32.xlu1 %v2217_v58, %s1987_s10 }
 0xb8d   :  { %v1297_v10 = vpop.f32.mrf.mxu2 }
 0xb8e   :  { %v1316_v27 = vpop.f32.mrf.mxu3 }
 0xb8f   :  { %v1836_v28 = vpack.i.bf16 %v1337_v26, %v1316_v27  ;;  %v1339_v29 = vpop.f32.mrf.mxu0 }
 0xb90   :  { %v1442_v29 = vperm.slane %v2233_v24, 2 }
 0xb91   :  { %1837 = vrot.lane.b32.xlu0 %v1836_v28, %s1989_s12 }
 0xb93   :  { %v1274_v30 = vpop.f32.mrf.mxu1 }
 0xb94   :  { %v1831_v31 = vpack.i.bf16 %v1295_v25, %v1274_v30 }
 0xb96   :  { %v1318_v42 = vpop.f32.mrf.mxu3  ;;  %1832 = vrot.lane.b32.xlu2 %v1831_v31, %s1988_s11 }
 0xb9b   :  { %v1276_v34 = vpop.f32.mrf.mxu1 }
 0xb9c   :  { %v1445_v34 = vperm.slane %v2233_v24, 3 }
 0xbf0   :  { %v1833_v58 = vpop.permute.xlu2 %1832 }
 0xbf1   :  { %v1835_v41 = vunpack.i.h.bf16 %v1833_v58  ;;  %v1834_v45 = vunpack.i.l.bf16 %v1833_v58 }
 0xbf3   :  { %v1828_v35 = vpop.permute.xlu1 %1827 }
 0xbf4   :  { %v1830_v38 = vunpack.i.h.bf16 %v1828_v35  ;;  %v1829_v33 = vunpack.i.l.bf16 %v1828_v35 }
 0xbf6   :  { %v1366_v39 = vsel %vm110_vm1, %v1211_v17, %v1830_v38  ;;  %v1365_v40 = vsel %vm110_vm1, %v1190_v61, %v1829_v33 }
 0xbf7   :  { %v1367_v54 = vsel %vm589_vm3, %v1365_v40, %v1834_v45  ;;  %v1368_v62 = vsel %vm589_vm3, %v1366_v39, %v1835_v41  ;;  %v1797_v39 = vld [vmem:[%s2435_s3 + $0x38] sm:$0xff]  ;;  %v1796_v40 = vld [vmem:[%s2435_s3 + $0x30] sm:$0xff]  ;;  %v1795_v41 = vld [vmem:[%s2435_s3 + $0x28] sm:$0xff] }
 0xbf8   :  { %1528 = vmatpush.bf16.msrb.mxu3 %v1797_v39  ;;  %v1794_v45 = vld [vmem:[%s2435_s3 + $0x20] sm:$0xff] }
 0xbfb   :  { %v1374_v37 = vpop.permute.xlu1 %1373 }
 0xbfc   :  { %1389 = vmatpush.bf16.msrb.mxu1 %v1374_v37  ;;  %1529 = vmatpush.bf16.msrb.mxu3 %v1796_v40 }
 0xc00   :  { %1530 = vmatpush.bf16.msrb.mxu3 %v1795_v41 }
 0xc03   :  { %v1838_v47 = vpop.permute.xlu0 %1837 }
 0xc04   :  { %v1840_v48 = vunpack.i.h.bf16 %v1838_v47  ;;  %v1839_v49 = vunpack.i.l.bf16 %v1838_v47  ;;  %1531 = vmatpush.bf16.msrb.mxu3 %v1794_v45 }
 0xc06   :  { %v1369_v3 = vsel %vm592_vm4, %v1367_v54, %v1839_v49  ;;  %v1370_v50 = vsel %vm592_vm4, %v1368_v62, %v1840_v48  ;;  %v1454_v48 = vperm.slane %v2233_v24, 6 }
 0xc07   :  { %v1371_v63 = vpack.c.bf16 %v1370_v50, %v1369_v3 }
 0xc09   :  { %1743 = vmatmul.msk.bf16.vlgmr.msrb.gmra.mxu1 %vm59_vm0, %v1371_v63 }
 0xc86   :  { %v1391_v52 = vpop.f32.mrf.mxu1 }
 0xc87   :  { %v1392_v55 = vadd.f32 %v1391_v52, %v1372_v51 }
 0xc89   :  { %v1396_v56 = vadd.f32 %v1392_v55, %v2223_v21 }
 0xc8b   :  { %v1398_v57 = vsel %vm59_vm0, %v1396_v56, 0.0 }
 0xc8c   :  { %1399 = vadd.xlane.f32.xlu2 %v1398_v57 }
 0xc8e   :  { %v1393_v32 = vpop.f32.mrf.mxu1 }
 0xc8f   :  { %v1394_v43 = vadd.f32 %v1393_v32, %v1372_v51  ;;  %v1496_v51 = vperm.slane %v2233_v24, 7 }
 0xc91   :  { %v1397_v59 = vadd.f32 %v1394_v43, %v2225_v22  ;;  %v1793_v22 = vld [vmem:[%s2434_s2 + $0x18] sm:$0xff] }
 0xc92   :  { %1476 = vmatpush.bf16.msrb.mxu2 %v1793_v22 }
 0xc93   :  { %v1401_v60 = vsel %vm59_vm0, %v1397_v59, 0.0 }
 0xc94   :  { %1402 = vadd.xlane.f32.xlu0 %v1401_v60 }
 0xc96   :  { %1477 = vmatpush.bf16.msrb.mxu2 %v1792_v12 }
 0xcff   :  { %v1400_v36 = vpop.xlane.xlu2 %1399 }
 0xd00   :  { %v1404_v61 = vmul.f32 %v1400_v36, %v2169_v46 }
 0xd02   :  { %v1406_v0 = vsub.f32 %v1396_v56, %v1404_v61 }
 0xd04   :  { %v1408_v2 = vmul.f32 %v1406_v0, %v1406_v0 }
 0xd06   :  { %v1410_v4 = vsel %vm59_vm0, %v1408_v2, 0.0 }
 0xd07   :  { %v1403_v53 = vpop.xlane.xlu0 %1402  ;;  %1411 = vadd.xlane.f32.xlu1 %v1410_v4 }
 0xd08   :  { %v1405_v21 = vmul.f32 %v1403_v53, %v2169_v46 }
 0xd0a   :  { %v1407_v6 = vsub.f32 %v1397_v59, %v1405_v21 }
 0xd0c   :  { %v1409_v7 = vmul.f32 %v1407_v6, %v1407_v6 }
 0xd0e   :  { %v1413_v8 = vsel %vm59_vm0, %v1409_v7, 0.0 }
 0xd0f   :  { %1414 = vadd.xlane.f32.xlu2 %v1413_v8 }
 0xd7a   :  { %v1412_v9 = vpop.xlane.xlu1 %1411 }
 0xd7b   :  { %v1416_v11 = vmul.f32 %v1412_v9, %v2169_v46 }
 0xd7d   :  { %v1418_v13 = vadd.f32 1e-05, %v1416_v11 }
 0xd7f   :  { %1915 = vrsqrt.f32 %v1418_v13  ;;  %vm1426_vm2 = vweird.f32 %v1418_v13 }
 0xd82   :  { %v1415_v14 = vpop.xlane.xlu2 %1414 }
 0xd83   :  { %v1417_v15 = vmul.f32 %v1415_v14, %v2169_v46 }
 0xd85   :  { %v1916_v16 = vpop.eup %1915  ;;  %v1419_v17 = vadd.f32 1e-05, %v1417_v15 }
 0xd86   :  { %v1421_v1 = vmul.f32 %v1916_v16, %v1418_v13  ;;  %vm1427_vm1 = vweird.f32 %v1916_v16 }
 0xd87   :  { %1917 = vrsqrt.f32 %v1419_v17  ;;  %vm1428_vm3 = vmor %vm1426_vm2, %vm1427_vm1  ;;  %vm1436_vm8 = vweird.f32 %v1419_v17 }
 0xd88   :  { %v1422_v18 = vmul.f32 %v1916_v16, %v1421_v1 }
 0xd8a   :  { %v1423_v19 = vmul.f32 0.5, %v1422_v18 }
 0xd8c   :  { %v1424_v20 = vsub.f32 1.5, %v1423_v19 }
 0xd8d   :  { %v1918_v23 = vpop.eup %1917 }
 0xd8e   :  { %v1425_v25 = vmul.f32 %v1916_v16, %v1424_v20  ;;  %v1431_v5 = vmul.f32 %v1918_v23, %v1419_v17  ;;  %vm1437_vm4 = vweird.f32 %v1918_v23 }
 0xd8f   :  { %vm1438_vm9 = vmor %vm1436_vm8, %vm1437_vm4 }
 0xd90   :  { %v1432_v26 = vmul.f32 %v1918_v23, %v1431_v5  ;;  %v1429_v10 = vsel %vm1428_vm3, %v1916_v16, %v1425_v25  ;;  %v1584_v25 = vperm.slane %v2233_v24, 4 }
 0xd91   :  { %v1440_v30 = vmul.f32 %v1429_v10, %v1406_v0 }
 0xd92   :  { %v1433_v27 = vmul.f32 0.5, %v1432_v26 }
 0xd93   :  { %v1443_v44 = vmul.f32 %v1442_v29, %v1440_v30 }
 0xd94   :  { %v1434_v28 = vsub.f32 1.5, %v1433_v27  ;;  %v1587_v27 = vperm.slane %v2233_v24, 5 }
 0xd95   :  { %v1446_v38 = vadd.f32 %v1445_v34, %v1443_v44 }
 0xd96   :  { %v1435_v31 = vmul.f32 %v1918_v23, %v1434_v28 }
 0xd98   :  { %v1439_v42 = vsel %vm1438_vm9, %v1918_v23, %v1435_v31 }
 0xd99   :  { %v1441_v35 = vmul.f32 %v1439_v42, %v1407_v6 }
 0xd9b   :  { %v1444_v37 = vmul.f32 %v1442_v29, %v1441_v35 }
 0xd9d   :  { %v1447_v33 = vadd.f32 %v1445_v34, %v1444_v37 }
 0xd9f   :  { %v1448_v58 = vpack.c.bf16 %v1447_v33, %v1446_v38 }
 0xda1   :  { %1756 = vmatmul.msk.bf16.vlgmr.msrb.gmra.mxu2 %vm59_vm0, %v1448_v58 }
 0xe24   :  { %v1479_v47 = vpop.f32.mrf.mxu2 }
 0xe25   :  { %v1480_v49 = vadd.f32 %v1479_v47, %v1454_v48 }
 0xe27   :  { %v1484_v3 = vmax.f32 %v1480_v49, 0.0 }
 0xe2c   :  { %v1481_v54 = vpop.f32.mrf.mxu2 }
 0xe2d   :  { %v1482_v62 = vadd.f32 %v1481_v54, %v1454_v48 }
 0xe2f   :  { %v1485_v50 = vmax.f32 %v1482_v62, 0.0 }
 0xe31   :  { %v1486_v63 = vpack.c.bf16 %v1485_v50, %v1484_v3 }
 0xe33   :  { %1781 = vmatmul.msk.bf16.vlgmr.msrb.gmra.mxu3 %vm750_vm12, %v1486_v63 }
 0xeb6   :  { %v1533_v52 = vpop.f32.mrf.mxu3 }
 0xeb7   :  { %v1534_v55 = vadd.f32 %v1533_v52, %v1496_v51 }
 0xeb9   :  { %v1538_v56 = vadd.f32 %v1534_v55, %v1446_v38 }
 0xebb   :  { %v1540_v57 = vsel %vm59_vm0, %v1538_v56, 0.0 }
 0xebc   :  { %1541 = vadd.xlane.f32.xlu0 %v1540_v57 }
 0xebe   :  { %v1535_v32 = vpop.f32.mrf.mxu3 }
 0xebf   :  { %v1536_v43 = vadd.f32 %v1535_v32, %v1496_v51 }
 0xec1   :  { %v1539_v59 = vadd.f32 %v1536_v43, %v1447_v33  ;;  %v1590_v43 = vld [vmem:[%s2436_s4 + $0x10] sm:$0x3]  ;;  %s1991_s4 = smov [#allocation5]  }
 0xec2   :  { %s1647_s18 = sshll.u32 %s1991_s4, 4  ;;  %s1648_s18 = int_to_ptr.vmem [resolvable:$true] %s1647_s18 }
 0xec3   :  { %v1543_v60 = vsel %vm59_vm0, %v1539_v59, 0.0 }
 0xec4   :  { %1544 = vadd.xlane.f32.xlu1 %v1543_v60 }
 0xf2f   :  { %v1542_v36 = vpop.xlane.xlu0 %1541 }
 0xf30   :  { %v1546_v61 = vmul.f32 %v1542_v36, %v2169_v46 }
 0xf32   :  { %v1548_v0 = vsub.f32 %v1538_v56, %v1546_v61 }
 0xf34   :  { %v1550_v2 = vmul.f32 %v1548_v0, %v1548_v0 }
 0xf36   :  { %v1552_v4 = vsel %vm59_vm0, %v1550_v2, 0.0 }
 0xf37   :  { %v1545_v53 = vpop.xlane.xlu1 %1544  ;;  %1553 = vadd.xlane.f32.xlu2 %v1552_v4 }
 0xf38   :  { %v1547_v21 = vmul.f32 %v1545_v53, %v2169_v46  ;;  %v1638_v53 = vperm.slane %v1590_v43, 1 }
 0xf3a   :  { %v1549_v6 = vsub.f32 %v1539_v59, %v1547_v21 }
 0xf3c   :  { %v1551_v7 = vmul.f32 %v1549_v6, %v1549_v6 }
 0xf3e   :  { %v1555_v8 = vsel %vm59_vm0, %v1551_v7, 0.0 }
 0xf3f   :  { %1556 = vadd.xlane.f32.xlu0 %v1555_v8 }
 0xfaa   :  { %v1554_v22 = vpop.xlane.xlu2 %1553 }
 0xfab   :  { %v1558_v9 = vmul.f32 %v1554_v22, %v2169_v46 }
 0xfad   :  { %v1560_v11 = vadd.f32 1e-05, %v1558_v9 }
 0xfaf   :  { %1919 = vrsqrt.f32 %v1560_v11  ;;  %vm1568_vm11 = vweird.f32 %v1560_v11 }
 0xfb2   :  { %v1557_v12 = vpop.xlane.xlu0 %1556 }
 0xfb3   :  { %v1559_v13 = vmul.f32 %v1557_v12, %v2169_v46 }
 0xfb5   :  { %v1920_v14 = vpop.eup %1919  ;;  %v1561_v15 = vadd.f32 1e-05, %v1559_v13 }
 0xfb6   :  { %v1563_v16 = vmul.f32 %v1920_v14, %v1560_v11  ;;  %vm1569_vm10 = vweird.f32 %v1920_v14 }
 0xfb7   :  { %1921 = vrsqrt.f32 %v1561_v15  ;;  %vm1570_vm12 = vmor %vm1568_vm11, %vm1569_vm10  ;;  %vm1578_vm14 = vweird.f32 %v1561_v15 }
 0xfb8   :  { %v1564_v17 = vmul.f32 %v1920_v14, %v1563_v16 }
 0xfba   :  { %v1565_v1 = vmul.f32 0.5, %v1564_v17 }
 0xfbc   :  { %v1566_v18 = vsub.f32 1.5, %v1565_v1 }
 0xfbd   :  { %v1922_v19 = vpop.eup %1921 }
 0xfbe   :  { %v1567_v20 = vmul.f32 %v1920_v14, %v1566_v18  ;;  %v1573_v23 = vmul.f32 %v1922_v19, %v1561_v15  ;;  %vm1579_vm13 = vweird.f32 %v1922_v19 }
 0xfbf   :  { %vm1580_vm15 = vmor %vm1578_vm14, %vm1579_vm13 }
 0xfc0   :  { %v1574_v5 = vmul.f32 %v1922_v19, %v1573_v23  ;;  %v1571_v26 = vsel %vm1570_vm12, %v1920_v14, %v1567_v20 }
 0xfc1   :  { %v1582_v10 = vmul.f32 %v1571_v26, %v1548_v0  ;;  %v1635_v0 = vperm.slane %v1590_v43, 0 }
 0xfc2   :  { %v1575_v28 = vmul.f32 0.5, %v1574_v5 }
 0xfc3   :  { %v1585_v29 = vmul.f32 %v1584_v25, %v1582_v10 }
 0xfc4   :  { %v1576_v30 = vsub.f32 1.5, %v1575_v28 }
 0xfc5   :  { %v1588_v31 = vadd.f32 %v1587_v27, %v1585_v29 }
 0xfc6   :  { %v1577_v42 = vmul.f32 %v1922_v19, %v1576_v30 }
 0xfc7   :  { %v1591_v34 = vsel %vm59_vm0, %v1588_v31, 0.0 }
 0xfc8   :  { %1592 = vadd.xlane.f32.xlu1 %v1591_v34  ;;  %v1581_v44 = vsel %vm1580_vm15, %v1922_v19, %v1577_v42 }
 0xfc9   :  { %v1583_v35 = vmul.f32 %v1581_v44, %v1549_v6 }
 0xfcb   :  { %v1586_v37 = vmul.f32 %v1584_v25, %v1583_v35 }
 0xfcd   :  { %v1589_v38 = vadd.f32 %v1587_v27, %v1586_v37 }
 0xfcf   :  { %v1594_v33 = vsel %vm59_vm0, %v1589_v38, 0.0 }
 0xfd0   :  { %1595 = vadd.xlane.f32.xlu2 %v1594_v33 }
0x103b   :  { %v1593_v58 = vpop.xlane.xlu1 %1592 }
0x103c   :  { %v1597_v24 = vmul.f32 %v1593_v58, %v2169_v46 }
0x103e   :  { %v1599_v39 = vsub.f32 %v1588_v31, %v1597_v24 }
0x1040   :  { %v1601_v40 = vmul.f32 %v1599_v39, %v1599_v39 }
0x1042   :  { %v1603_v41 = vsel %vm59_vm0, %v1601_v40, 0.0 }
0x1043   :  { %1604 = vadd.xlane.f32.xlu0 %v1603_v41  ;;  %v1596_v45 = vpop.xlane.xlu2 %1595 }
0x1044   :  { %v1598_v47 = vmul.f32 %v1596_v45, %v2169_v46 }
0x1046   :  { %v1600_v48 = vsub.f32 %v1589_v38, %v1598_v47 }
0x1048   :  { %v1602_v49 = vmul.f32 %v1600_v48, %v1600_v48 }
0x104a   :  { %v1606_v54 = vsel %vm59_vm0, %v1602_v49, 0.0 }
0x104b   :  { %1607 = vadd.xlane.f32.xlu1 %v1606_v54 }
0x10b6   :  { %v1605_v62 = vpop.xlane.xlu0 %1604 }
0x10b7   :  { %v1609_v3 = vmul.f32 %v1605_v62, %v2169_v46 }
0x10b9   :  { %v1611_v50 = vadd.f32 1e-05, %v1609_v3 }
0x10bb   :  { %1923 = vrsqrt.f32 %v1611_v50  ;;  %vm1619_vm6 = vweird.f32 %v1611_v50 }
0x10be   :  { %v1608_v63 = vpop.xlane.xlu1 %1607 }
0x10bf   :  { %v1610_v51 = vmul.f32 %v1608_v63, %v2169_v46 }
0x10c1   :  { %v1924_v52 = vpop.eup %1923  ;;  %v1612_v55 = vadd.f32 1e-05, %v1610_v51 }
0x10c2   :  { %v1614_v56 = vmul.f32 %v1924_v52, %v1611_v50  ;;  %vm1620_vm5 = vweird.f32 %v1924_v52 }
0x10c3   :  { %1925 = vrsqrt.f32 %v1612_v55  ;;  %vm1621_vm7 = vmor %vm1619_vm6, %vm1620_vm5  ;;  %vm1629_vm2 = vweird.f32 %v1612_v55 }
0x10c4   :  { %v1615_v57 = vmul.f32 %v1924_v52, %v1614_v56 }
0x10c6   :  { %v1616_v32 = vmul.f32 0.5, %v1615_v57 }
0x10c8   :  { %v1617_v59 = vsub.f32 1.5, %v1616_v32 }
0x10c9   :  { %v1926_v60 = vpop.eup %1925 }
0x10ca   :  { %v1618_v36 = vmul.f32 %v1924_v52, %v1617_v59  ;;  %v1624_v61 = vmul.f32 %v1926_v60, %v1612_v55  ;;  %vm1630_vm1 = vweird.f32 %v1926_v60 }
0x10cb   :  { %vm1631_vm3 = vmor %vm1629_vm2, %vm1630_vm1 }
0x10cc   :  { %v1622_v2 = vsel %vm1621_vm7, %v1924_v52, %v1618_v36  ;;  %v1625_v46 = vmul.f32 %v1926_v60, %v1624_v61 }
0x10cd   :  { %v1633_v4 = vmul.f32 %v1622_v2, %v1599_v39 }
0x10ce   :  { %v1626_v21 = vmul.f32 0.5, %v1625_v46 }
0x10cf   :  { %v1636_v6 = vmul.f32 %v1635_v0, %v1633_v4 }
0x10d0   :  { %v1627_v7 = vsub.f32 1.5, %v1626_v21 }
0x10d1   :  { %v1639_v8 = vadd.f32 %v1638_v53, %v1636_v6 }
0x10d2   :  { %v1628_v22 = vmul.f32 %v1926_v60, %v1627_v7 }
0x10d3   :  { %1641 = vst.msk [vmem:[#allocation5] sm:$0xff] %vm59_vm0, %v1639_v8 }
0x10d4   :  { %v1632_v9 = vsel %vm1631_vm3, %v1926_v60, %v1628_v22 }
0x10d5   :  { %v1634_v11 = vmul.f32 %v1632_v9, %v1600_v48 }
0x10d7   :  { %v1637_v12 = vmul.f32 %v1635_v0, %v1634_v11 }
0x10d9   :  { %v1640_v13 = vadd.f32 %v1638_v53, %v1637_v12 }
0x10db   :  { %1642 = vst.msk [vmem:[#allocation5 + $0x8] sm:$0xff] %vm59_vm0, %v1640_v13 }
0x10dc   :  { %1655 = dma.vmem_to_hbm [thread:$0]  %s1648_s18, 256, %s1650_s21, [#allocation4], %s1980_s23, %s1980_s23, %s1981_s24  }
0x10dd   :  { %1977 = dma.done.wait [#allocation4], 256  }
0x10de   :  { %1978 = vsyncadd [#allocation4], 4294967040 }
0x10df   :  { %1660 = vsyncpa [#allocation3], 1 }
0x10e0   :  { %1661 = vsyncpa [#allocation4], 1 }

</bundles_post_ra>
